<compile_context>
chip_gen: v5e
topology: v5e:2x2
jax: 0.10.0
libtpu: 0.0.40
codegen_flags: <defaults>
</compile_context>

<pallas_src>
import functools
import math

import jax
import jax.numpy as jnp
from jax.experimental import pallas as pl
from jax.experimental.pallas import tpu as pltpu


def _round_up(n, m):
    return -(-n // m) * m


@functools.lru_cache(maxsize=None)
def _vmem_limit_bytes():
    """Per-generation VMEM budget: ~80% of physical (v7x ~51 MiB, v6e/v5e ~102 MiB)."""
    cap = 128 * 1024 * 1024
    try:
        cap = int(pltpu.get_tpu_info().vmem_capacity_bytes)
    except Exception:
        pass
    return int(cap * 4 // 5)


def _weight_pipeline_kwargs():
    """Single-buffer resident (constant index_map) weights when supported."""
    if not hasattr(pl, "Buffered"):
        return {}
    try:
        mode = pl.Buffered(1)
        pl.BlockSpec((8, 128), lambda i: (0, 0), pipeline_mode=mode)
    except (TypeError, ValueError):
        return {}
    return {"pipeline_mode": mode}


_WEIGHT_PIPELINE = _weight_pipeline_kwargs()


def _const_spec(shape, wkw):
    return pl.BlockSpec(shape, lambda *_: (0,) * len(shape), **wkw)


def _layer_norm(x, gamma, beta, eps):
    mu = jnp.mean(x, axis=-1, keepdims=True)
    xc = x - mu
    var = jnp.mean(xc * xc, axis=-1, keepdims=True)
    return xc * jax.lax.rsqrt(var + eps) * gamma + beta


# --------------------------------------------------------------------------
# Attention sub-block: LN1 + fused QKV + MHSA + output proj + residual
#   grid = (batch, query_tile); K/V/Q projected once per batch into scratch.
# --------------------------------------------------------------------------
def _attn_kernel(x_ref, mask_ref, g1_ref, be1_ref, wqkv_ref, bqkv_ref,
                 wo_ref, bo_ref, o_ref, q_scr, k_scr, v_scr, ctx_scr,
                 *, num_heads, head_dim, eps, mm_dtype, tq):
    hidden = num_heads * head_dim
    qi = pl.program_id(1)

    # Project the whole sequence once per batch element (fused QKV matmul).
    @pl.when(qi == 0)
    def _():
        xn = _layer_norm(x_ref[0], g1_ref[...], be1_ref[...], eps)
        qkv = jnp.dot(xn.astype(mm_dtype), wqkv_ref[...],
                      preferred_element_type=jnp.float32) + bqkv_ref[...]
        q_scr[...] = qkv[:, :hidden].astype(mm_dtype)
        k_scr[...] = qkv[:, hidden:2 * hidden].astype(mm_dtype)
        v_scr[...] = qkv[:, 2 * hidden:].astype(mm_dtype)

    row0 = pl.multiple_of(qi * tq, tq)
    x_rows = x_ref[0, pl.ds(row0, tq), :]            # [tq, H] residual rows (f32)
    q = q_scr[pl.ds(row0, tq), :]                    # [tq, H] query rows
    mask = mask_ref[0]                               # [1, S] additive key mask
    scale = head_dim ** -0.5
    exact = (mm_dtype == jnp.float32)

    for h in range(num_heads):                       # static head loop -> scratch slices
        lo, hi = h * head_dim, (h + 1) * head_dim
        s = jax.lax.dot_general(q[:, lo:hi], k_scr[:, lo:hi],
                                (((1,), (1,)), ((), ())),
                                preferred_element_type=jnp.float32) * scale
        s = s + mask                                 # broadcast over query rows
        s = s - jnp.max(s, axis=-1, keepdims=True)
        p = jnp.exp(s)
        denom = jnp.sum(p, axis=-1, keepdims=True)
        ctx_h = jnp.dot(p.astype(mm_dtype), v_scr[:, lo:hi],
                        preferred_element_type=jnp.float32)
        # Normalize the [tq, dh] context (not the [tq, S] probs); EUP approx
        # reciprocal on the bf16 production path, exact on the f32 check path.
        ctx_scr[:, lo:hi] = ctx_h * pl.reciprocal(denom, approx=not exact)

    attn = jnp.dot(ctx_scr[...].astype(mm_dtype), wo_ref[...],
                   preferred_element_type=jnp.float32) + bo_ref[...]
    # TODO(synk): attention-prob and residual dropout omitted (eval mode -> identity).
    o_ref[0] = (x_rows + attn).astype(o_ref.dtype)


def _pick_q_tile(S, target=256):
    cap = min(_round_up(target, 8), S)
    for t in range(cap, 7, -1):
        if S % t == 0 and t % 8 == 0:
            return t
    return S


def attention_block(x, mask_add, p, *, num_heads, eps, mm_dtype=jnp.bfloat16,
                    tq_target=256):
    B, S, H = x.shape
    head_dim = H // num_heads
    tq = _pick_q_tile(S, tq_target)
    n_qt = S // tq

    # Pre-cast / fuse weights in the wrapper (halves weight DMA + VMEM in bf16).
    wqkv = jnp.concatenate([p["wq"], p["wk"], p["wv"]], axis=1).astype(mm_dtype)
    bqkv = jnp.concatenate([p["bq"], p["bk"], p["bv"]]).reshape(1, 3 * H)
    wo = p["wo"].astype(mm_dtype)

    kernel = functools.partial(_attn_kernel, num_heads=num_heads, head_dim=head_dim,
                               eps=eps, mm_dtype=mm_dtype, tq=tq)
    wbytes = jnp.dtype(mm_dtype).itemsize
    cost = pl.CostEstimate(
        flops=int(B * (8 * S * H * H + 4 * S * S * H)),
        transcendentals=int(B * num_heads * S * S),
        bytes_accessed=int(4 * (2 * B * S * H + B * S + 7 * H) + wbytes * 4 * H * H))

    def builder(wkw):
        return pl.pallas_call(
            kernel,
            out_shape=jax.ShapeDtypeStruct((B, S, H), x.dtype),
            grid_spec=pltpu.PrefetchScalarGridSpec(
                num_scalar_prefetch=0,
                grid=(B, n_qt),
                in_specs=[
                    pl.BlockSpec((1, S, H), lambda b, qt: (b, 0, 0)),   # x (resident per batch)
                    pl.BlockSpec((1, 1, S), lambda b, qt: (b, 0, 0)),   # additive mask
                    _const_spec((1, H), wkw), _const_spec((1, H), wkw),          # ln1 g,b
                    _const_spec((H, 3 * H), wkw), _const_spec((1, 3 * H), wkw),  # Wqkv,bqkv
                    _const_spec((H, H), wkw), _const_spec((1, H), wkw),          # Wo,bo
                ],
                out_specs=pl.BlockSpec((1, tq, H), lambda b, qt: (b, qt, 0)),
                scratch_shapes=[
                    pltpu.VMEM((S, H), mm_dtype),      # Q (whole sequence)
                    pltpu.VMEM((S, H), mm_dtype),      # K
                    pltpu.VMEM((S, H), mm_dtype),      # V
                    pltpu.VMEM((tq, H), jnp.float32),  # per-tile context
                ],
            ),
            compiler_params=pltpu.CompilerParams(
                dimension_semantics=("parallel", "arbitrary"),
                vmem_limit_bytes=_vmem_limit_bytes()),
            cost_estimate=cost,
        )

    operands = (x, mask_add.reshape(B, 1, S),
                p["ln1_g"].reshape(1, H), p["ln1_b"].reshape(1, H),
                wqkv, bqkv, wo, p["bo"].reshape(1, H))
    try:
        return builder(_WEIGHT_PIPELINE)(*operands)
    except Exception:
        if not _WEIGHT_PIPELINE:
            raise
        return builder({})(*operands)      # fallback: default (double) buffering


# --------------------------------------------------------------------------
# FFN sub-block: LN2 + fc1 + GELU + fc2 + residual, padded multiple-of-8 row tiles
# --------------------------------------------------------------------------
def _ffn_kernel(x_ref, g2_ref, be2_ref, w1_ref, b1_ref, w2_ref, b2_ref, o_ref,
                *, eps, mm_dtype, gelu_approx):
    x = x_ref[...]                                      # [tm, H] residual input
    xn = _layer_norm(x, g2_ref[...], be2_ref[...], eps)
    h = jnp.dot(xn.astype(mm_dtype), w1_ref[...],
                preferred_element_type=jnp.float32) + b1_ref[...]
    if gelu_approx:
        h = jax.nn.gelu(h, approximate=True)            # tanh GELU -> EUP (v5e VALU relief)
    else:
        # exact GELU (nn.GELU default): 0.5*x*(1+erf(x/sqrt(2)))
        h = 0.5 * h * (1.0 + jax.lax.erf(h * (1.0 / math.sqrt(2.0))))
    y = jnp.dot(h.astype(mm_dtype), w2_ref[...],
                preferred_element_type=jnp.float32) + b2_ref[...]
    # TODO(synk): hidden dropout omitted (eval mode -> identity).
    o_ref[...] = (x + y).astype(o_ref.dtype)


def _pick_row_tile(M, target=512):
    n_tiles = max(1, -(-M // max(8, _round_up(target, 8))))
    return _round_up(-(-M // n_tiles), 8)


def ffn_block(x, p, *, eps, mm_dtype=jnp.bfloat16, tm_target=512, gelu_approx=False):
    B, S, H = x.shape
    I = p["w1"].shape[1]
    M = B * S
    tm = _pick_row_tile(M, tm_target)     # multiple of 8; big tiles feed the MXU
    Mp = _round_up(M, tm)
    x2d = x.reshape(M, H)
    if Mp != M:
        x2d = jnp.pad(x2d, ((0, Mp - M), (0, 0)))   # padded rows dropped after the call

    w1 = p["w1"].astype(mm_dtype)         # pre-cast weights in the wrapper
    w2 = p["w2"].astype(mm_dtype)
    kernel = functools.partial(_ffn_kernel, eps=eps, mm_dtype=mm_dtype,
                               gelu_approx=gelu_approx)
    wbytes = jnp.dtype(mm_dtype).itemsize
    cost = pl.CostEstimate(
        flops=int(4 * M * H * I),
        transcendentals=int(M * I),
        bytes_accessed=int(4 * 2 * M * H + wbytes * 2 * H * I + 4 * (I + 3 * H)))

    def builder(wkw):
        return pl.pallas_call(
            kernel,
            out_shape=jax.ShapeDtypeStruct((Mp, H), x.dtype),
            grid_spec=pltpu.PrefetchScalarGridSpec(
                num_scalar_prefetch=0,
                grid=(Mp // tm,),
                in_specs=[
                    pl.BlockSpec((tm, H), lambda i: (i, 0)),                   # rows
                    _const_spec((1, H), wkw), _const_spec((1, H), wkw),        # ln2 g,b
                    _const_spec((H, I), wkw), _const_spec((1, I), wkw),        # W1,b1
                    _const_spec((I, H), wkw), _const_spec((1, H), wkw),        # W2,b2
                ],
                out_specs=pl.BlockSpec((tm, H), lambda i: (i, 0)),
            ),
            compiler_params=pltpu.CompilerParams(
                dimension_semantics=("parallel",),
                vmem_limit_bytes=_vmem_limit_bytes()),
            cost_estimate=cost,
        )

    operands = (x2d, p["ln2_g"].reshape(1, H), p["ln2_b"].reshape(1, H),
                w1, p["b1"].reshape(1, I), w2, p["b2"].reshape(1, H))
    try:
        out2d = builder(_WEIGHT_PIPELINE)(*operands)
    except Exception:
        if not _WEIGHT_PIPELINE:
            raise
        out2d = builder({})(*operands)
    return out2d[:M].reshape(B, S, H)


# --------------------------------------------------------------------------
# Full block
# --------------------------------------------------------------------------
def transformer_block(x, params, attention_mask=None, *, num_heads, eps=1e-12,
                      mm_dtype=jnp.bfloat16, tq_target=256, tm_target=512,
                      gelu_approx=False):
    B, S, H = x.shape
    if attention_mask is None:
        mask_add = jnp.zeros((B, S), dtype=jnp.float32)
    else:
        # 2-D mask: bool (True=attend) or additive float (>-10000 = attend).
        if attention_mask.dtype == jnp.bool_:
            bool_mask = attention_mask
        else:
            bool_mask = attention_mask > -10000.0
        mask_add = jnp.where(bool_mask, 0.0,
                             jnp.finfo(jnp.float32).min).astype(jnp.float32)
        # TODO(synk): 3-D / 4-D attention masks not supported in this kernel.
    h = attention_block(x, mask_add, params, num_heads=num_heads, eps=eps,
                        mm_dtype=mm_dtype, tq_target=tq_target)
    return ffn_block(h, params, eps=eps, mm_dtype=mm_dtype, tm_target=tm_target,
                     gelu_approx=gelu_approx)


# --------------------------------------------------------------------------
# Pure-JAX reference (mirrors the PyTorch module, eval mode)
# --------------------------------------------------------------------------
def _reference(x, p, attention_mask, num_heads, eps):
    B, S, H = x.shape
    dH = H // num_heads

    def ln(v, g, b):
        mu = jnp.mean(v, -1, keepdims=True)
        var = jnp.mean((v - mu) ** 2, -1, keepdims=True)
        return (v - mu) * jax.lax.rsqrt(var + eps) * g + b

    xn = ln(x, p["ln1_g"], p["ln1_b"])
    q = xn @ p["wq"] + p["bq"]
    k = xn @ p["wk"] + p["bk"]
    v = xn @ p["wv"] + p["bv"]
    split = lambda t: t.reshape(B, S, num_heads, dH).transpose(0, 2, 1, 3)
    q, k, v = split(q), split(k), split(v)
    s = jnp.einsum("bhqd,bhkd->bhqk", q, k) * dH ** -0.5
    if attention_mask is not None:
        add = jnp.where(attention_mask, 0.0,
                        jnp.finfo(jnp.float32).min)[:, None, None, :]
        s = s + add
    pr = jax.nn.softmax(s, axis=-1)
    ctx = jnp.einsum("bhqk,bhkd->bhqd", pr, v).transpose(0, 2, 1, 3).reshape(B, S, H)
    h = x + (ctx @ p["wo"] + p["bo"])
    hn = ln(h, p["ln2_g"], p["ln2_b"])
    f = hn @ p["w1"] + p["b1"]
    f = 0.5 * f * (1.0 + jax.lax.erf(f * (1.0 / math.sqrt(2.0))))
    f = f @ p["w2"] + p["b2"]
    return h + f


if __name__ == "__main__":
    # config: hidden=32, heads=4 (head_dim=8), intermediate=64, eps=1e-12
    B, S, H, I, NH = 2, 16, 32, 64, 4
    eps = 1e-12

    keys = jax.random.split(jax.random.PRNGKey(0), 17)

    def lin(kw, kb, fan_in, shape_w, shape_b):
        bound = 1.0 / math.sqrt(fan_in)
        w = jax.random.uniform(kw, shape_w, jnp.float32, -bound, bound)
        b = jax.random.uniform(kb, shape_b, jnp.float32, -bound, bound)
        return w, b

    wq, bq = lin(keys[0], keys[1], H, (H, H), (H,))
    wk, bk = lin(keys[2], keys[3], H, (H, H), (H,))
    wv, bv = lin(keys[4], keys[5], H, (H, H), (H,))
    wo, bo = lin(keys[6], keys[7], H, (H, H), (H,))
    w1, b1 = lin(keys[8], keys[9], H, (H, I), (I,))
    w2, b2 = lin(keys[10], keys[11], I, (I, H), (H,))
    params = dict(
        ln1_g=1.0 + 0.1 * jax.random.normal(keys[12], (H,), jnp.float32),
        ln1_b=0.1 * jax.random.normal(keys[13], (H,), jnp.float32),
        ln2_g=1.0 + 0.1 * jax.random.normal(keys[14], (H,), jnp.float32),
        ln2_b=0.1 * jax.random.normal(keys[15], (H,), jnp.float32),
        wq=wq, bq=bq, wk=wk, bk=bk, wv=wv, bv=bv, wo=wo, bo=bo,
        w1=w1, b1=b1, w2=w2, b2=b2)

    x = jax.random.normal(keys[16], (B, S, H), dtype=jnp.float32)

    # case 1: no attention mask, exact f32 path; tq_target=8 forces 2 query tiles
    out = transformer_block(x, params, None, num_heads=NH, eps=eps,
                            mm_dtype=jnp.float32, tq_target=8)
    jax.block_until_ready(out)
    ref = _reference(x, params, None, NH, eps)
    assert out.shape == (B, S, H)
    assert jnp.allclose(out, ref, atol=1e-4, rtol=1e-4), \
        float(jnp.max(jnp.abs(out - ref)))

    # case 2: 2-D key padding mask (last 5 keys of batch 1 masked), exact f32 path
    mask = jnp.ones((B, S), dtype=jnp.bool_).at[1, S - 5:].set(False)
    out_m = transformer_block(x, params, mask, num_heads=NH, eps=eps,
                              mm_dtype=jnp.float32, tq_target=8)
    jax.block_until_ready(out_m)
    ref_m = _reference(x, params, mask, NH, eps)
    assert jnp.allclose(out_m, ref_m, atol=1e-4, rtol=1e-4), \
        float(jnp.max(jnp.abs(out_m - ref_m)))

    # case 3: production bf16 path (default mm_dtype) — loose sanity check only
    out_bf = transformer_block(x, params, mask, num_heads=NH, eps=eps, tq_target=8)
    jax.block_until_ready(out_bf)
    assert out_bf.shape == (B, S, H)
    assert bool(jnp.all(jnp.isfinite(out_bf)))
    assert jnp.allclose(out_bf, ref_m, atol=1e-1, rtol=1e-1), \
        float(jnp.max(jnp.abs(out_bf - ref_m)))

    print("KERNEL_OK")
</pallas_src>

<mosaic_0001>
module attributes {stable_mosaic.version = 11 : i64} {
  func.func @_attn_kernel(%arg0: i32, %arg1: i32, %arg2: memref<1x16x32xf32, #tpu.memory_space<vmem>>, %arg3: memref<1x1x16xf32, #tpu.memory_space<vmem>>, %arg4: memref<1x32xf32, #tpu.memory_space<vmem>>, %arg5: memref<1x32xf32, #tpu.memory_space<vmem>>, %arg6: memref<32x96xf32, #tpu.memory_space<vmem>>, %arg7: memref<1x96xf32, #tpu.memory_space<vmem>>, %arg8: memref<32x32xf32, #tpu.memory_space<vmem>>, %arg9: memref<1x32xf32, #tpu.memory_space<vmem>>, %arg10: memref<1x8x32xf32, #tpu.memory_space<vmem>>, %arg11: memref<16x32xf32, #tpu.memory_space<vmem>>, %arg12: memref<16x32xf32, #tpu.memory_space<vmem>>, %arg13: memref<16x32xf32, #tpu.memory_space<vmem>>, %arg14: memref<8x32xf32, #tpu.memory_space<vmem>>) attributes {dimension_semantics = [#tpu.dimension_semantics<parallel>, #tpu.dimension_semantics<arbitrary>], iteration_bounds = array<i64: 2, 2>, scalar_prefetch = 0 : i64, scratch_operands = 4 : i64, tpu.core_type = #tpu.core_type<tc>, window_params = [{transform_indices = @transform_0, window_bounds = array<i64: 1, 16, 32>}, {transform_indices = @transform_1, window_bounds = array<i64: 1, 1, 16>}, {pipeline_mode = #tpu.pipeline_mode<synchronous>, transform_indices = @transform_2, window_bounds = array<i64: 1, 32>}, {pipeline_mode = #tpu.pipeline_mode<synchronous>, transform_indices = @transform_3, window_bounds = array<i64: 1, 32>}, {pipeline_mode = #tpu.pipeline_mode<synchronous>, transform_indices = @transform_4, window_bounds = array<i64: 32, 96>}, {pipeline_mode = #tpu.pipeline_mode<synchronous>, transform_indices = @transform_5, window_bounds = array<i64: 1, 96>}, {pipeline_mode = #tpu.pipeline_mode<synchronous>, transform_indices = @transform_6, window_bounds = array<i64: 32, 32>}, {pipeline_mode = #tpu.pipeline_mode<synchronous>, transform_indices = @transform_7, window_bounds = array<i64: 1, 32>}, {transform_indices = @transform_8, window_bounds = array<i64: 1, 8, 32>}]} {
    %c0_i32 = arith.constant 0 : i32
    %0 = arith.cmpi eq, %arg1, %c0_i32 : i32
    %1 = arith.extui %0 : i1 to i32
    %c0_i32_0 = arith.constant 0 : i32
    %2 = arith.cmpi ne, %1, %c0_i32_0 : i32
    scf.if %2 {
      %c0_56 = arith.constant 0 : index
      %c0_57 = arith.constant 0 : index
      %c0_58 = arith.constant 0 : index
      %102 = vector.load %arg2[%c0_56, %c0_57, %c0_58] : memref<1x16x32xf32, #tpu.memory_space<vmem>>, vector<1x16x32xf32>
      %103 = vector.shape_cast %102 : vector<1x16x32xf32> to vector<16x32xf32>
      %c0_59 = arith.constant 0 : index
      %c0_60 = arith.constant 0 : index
      %104 = vector.load %arg4[%c0_59, %c0_60] : memref<1x32xf32, #tpu.memory_space<vmem>>, vector<1x32xf32>
      %c0_61 = arith.constant 0 : index
      %c0_62 = arith.constant 0 : index
      %105 = vector.load %arg5[%c0_61, %c0_62] : memref<1x32xf32, #tpu.memory_space<vmem>>, vector<1x32xf32>
      %cst_63 = arith.constant dense<0.000000e+00> : vector<16xf32>
      %106 = vector.multi_reduction <add>, %103, %cst_63 [1] : vector<16x32xf32> to vector<16xf32>
      %107 = vector.shape_cast %106 : vector<16xf32> to vector<16x1xf32>
      %cst_64 = arith.constant 3.200000e+01 : f32
      %108 = vector.broadcast %cst_64 : f32 to vector<16x1xf32>
      %109 = arith.divf %107, %108 : vector<16x1xf32>
      %110 = vector.broadcast %109 : vector<16x1xf32> to vector<16x32xf32>
      %111 = arith.subf %103, %110 : vector<16x32xf32>
      %112 = arith.mulf %111, %111 : vector<16x32xf32>
      %cst_65 = arith.constant dense<0.000000e+00> : vector<16xf32>
      %113 = vector.multi_reduction <add>, %112, %cst_65 [1] : vector<16x32xf32> to vector<16xf32>
      %114 = vector.shape_cast %113 : vector<16xf32> to vector<16x1xf32>
      %cst_66 = arith.constant 3.200000e+01 : f32
      %115 = vector.broadcast %cst_66 : f32 to vector<16x1xf32>
      %116 = arith.divf %114, %115 : vector<16x1xf32>
      %cst_67 = arith.constant 9.99999996E-13 : f32
      %117 = vector.broadcast %cst_67 : f32 to vector<16x1xf32>
      %118 = arith.addf %116, %117 : vector<16x1xf32>
      %119 = math.rsqrt %118 : vector<16x1xf32>
      %120 = vector.broadcast %119 : vector<16x1xf32> to vector<16x32xf32>
      %121 = arith.mulf %111, %120 : vector<16x32xf32>
      %122 = vector.broadcast %104 : vector<1x32xf32> to vector<16x32xf32>
      %123 = arith.mulf %121, %122 : vector<16x32xf32>
      %124 = vector.broadcast %105 : vector<1x32xf32> to vector<16x32xf32>
      %125 = arith.addf %123, %124 : vector<16x32xf32>
      %c0_68 = arith.constant 0 : index
      %c0_69 = arith.constant 0 : index
      %126 = vector.load %arg6[%c0_68, %c0_69] : memref<32x96xf32, #tpu.memory_space<vmem>>, vector<32x96xf32>
      %cst_70 = arith.constant dense<0.000000e+00> : vector<16x96xf32>
      %127 = tpu.matmul %125, %126, %cst_70 {dimension_numbers = #tpu.dot_dimension_numbers<[1], [0], [0], [1], [0, 0, 1, 1], [], []>} : vector<16x32xf32>, vector<32x96xf32>, vector<16x96xf32> -> vector<16x96xf32>
      %c0_71 = arith.constant 0 : index
      %c0_72 = arith.constant 0 : index
      %128 = vector.load %arg7[%c0_71, %c0_72] : memref<1x96xf32, #tpu.memory_space<vmem>>, vector<1x96xf32>
      %129 = vector.broadcast %128 : vector<1x96xf32> to vector<16x96xf32>
      %130 = arith.addf %127, %129 : vector<16x96xf32>
      %131 = vector.extract_strided_slice %130 {offsets = [0, 0], sizes = [16, 32], strides = [1, 1]} : vector<16x96xf32> to vector<16x32xf32>
      %c0_73 = arith.constant 0 : index
      %c0_74 = arith.constant 0 : index
      %132 = vector.load %arg11[%c0_73, %c0_74] : memref<16x32xf32, #tpu.memory_space<vmem>>, vector<16x32xf32>
      tpu.vector_store %arg11[%c0_73, %c0_74], %131 {strides = array<i32>} : memref<16x32xf32, #tpu.memory_space<vmem>>, vector<16x32xf32>,
      %133 = vector.extract_strided_slice %130 {offsets = [0, 32], sizes = [16, 32], strides = [1, 1]} : vector<16x96xf32> to vector<16x32xf32>
      %c0_75 = arith.constant 0 : index
      %c0_76 = arith.constant 0 : index
      %134 = vector.load %arg12[%c0_75, %c0_76] : memref<16x32xf32, #tpu.memory_space<vmem>>, vector<16x32xf32>
      tpu.vector_store %arg12[%c0_75, %c0_76], %133 {strides = array<i32>} : memref<16x32xf32, #tpu.memory_space<vmem>>, vector<16x32xf32>,
      %135 = vector.extract_strided_slice %130 {offsets = [0, 64], sizes = [16, 32], strides = [1, 1]} : vector<16x96xf32> to vector<16x32xf32>
      %c0_77 = arith.constant 0 : index
      %c0_78 = arith.constant 0 : index
      %136 = vector.load %arg13[%c0_77, %c0_78] : memref<16x32xf32, #tpu.memory_space<vmem>>, vector<16x32xf32>
      tpu.vector_store %arg13[%c0_77, %c0_78], %135 {strides = array<i32>} : memref<16x32xf32, #tpu.memory_space<vmem>>, vector<16x32xf32>,
    } else {
    }
    %c8_i32 = arith.constant 8 : i32
    %3 = arith.muli %arg1, %c8_i32 : i32
    %4 = tpu.assume_multiple %3, 8 : i32
    %c0 = arith.constant 0 : index
    %5 = arith.index_cast %4 : i32 to index
    %c0_1 = arith.constant 0 : index
    %6 = vector.load %arg2[%c0, %5, %c0_1] : memref<1x16x32xf32, #tpu.memory_space<vmem>>, vector<1x8x32xf32>
    %7 = vector.shape_cast %6 : vector<1x8x32xf32> to vector<8x32xf32>
    %8 = arith.index_cast %4 : i32 to index
    %c0_2 = arith.constant 0 : index
    %9 = vector.load %arg11[%8, %c0_2] : memref<16x32xf32, #tpu.memory_space<vmem>>, vector<8x32xf32>
    %c0_3 = arith.constant 0 : index
    %c0_4 = arith.constant 0 : index
    %c0_5 = arith.constant 0 : index
    %10 = vector.load %arg3[%c0_3, %c0_4, %c0_5] : memref<1x1x16xf32, #tpu.memory_space<vmem>>, vector<1x1x16xf32>
    %11 = vector.shape_cast %10 : vector<1x1x16xf32> to vector<1x16xf32>
    %12 = vector.extract_strided_slice %9 {offsets = [0, 0], sizes = [8, 8], strides = [1, 1]} : vector<8x32xf32> to vector<8x8xf32>
    %c0_6 = arith.constant 0 : index
    %c0_7 = arith.constant 0 : index
    %13 = vector.load %arg12[%c0_6, %c0_7] : memref<16x32xf32, #tpu.memory_space<vmem>>, vector<16x8xf32>
    %cst = arith.constant dense<0.000000e+00> : vector<8x16xf32>
    %14 = tpu.matmul %12, %13, %cst {dimension_numbers = #tpu.dot_dimension_numbers<[1], [1], [0], [0], [0, 0, 1, 0], [], []>} : vector<8x8xf32>, vector<16x8xf32>, vector<8x16xf32> -> vector<8x16xf32>
    %cst_8 = arith.constant 0.353553385 : f32
    %15 = vector.broadcast %cst_8 : f32 to vector<8x16xf32>
    %16 = arith.mulf %14, %15 : vector<8x16xf32>
    %17 = vector.broadcast %11 : vector<1x16xf32> to vector<8x16xf32>
    %18 = arith.addf %16, %17 : vector<8x16xf32>
    %cst_9 = arith.constant dense<0xFF800000> : vector<8xf32>
    %19 = vector.multi_reduction <maximumf>, %18, %cst_9 [1] : vector<8x16xf32> to vector<8xf32>
    %20 = vector.shape_cast %19 : vector<8xf32> to vector<8x1xf32>
    %21 = vector.broadcast %20 : vector<8x1xf32> to vector<8x16xf32>
    %22 = arith.subf %18, %21 : vector<8x16xf32>
    %23 = math.exp %22 : vector<8x16xf32>
    %cst_10 = arith.constant dense<0.000000e+00> : vector<8xf32>
    %24 = vector.multi_reduction <add>, %23, %cst_10 [1] : vector<8x16xf32> to vector<8xf32>
    %25 = vector.shape_cast %24 : vector<8xf32> to vector<8x1xf32>
    %c0_11 = arith.constant 0 : index
    %c0_12 = arith.constant 0 : index
    %26 = vector.load %arg13[%c0_11, %c0_12] : memref<16x32xf32, #tpu.memory_space<vmem>>, vector<16x8xf32>
    %cst_13 = arith.constant dense<0.000000e+00> : vector<8x8xf32>
    %27 = tpu.matmul %23, %26, %cst_13 {dimension_numbers = #tpu.dot_dimension_numbers<[1], [0], [0], [1], [0, 0, 1, 1], [], []>} : vector<8x16xf32>, vector<16x8xf32>, vector<8x8xf32> -> vector<8x8xf32>
    %28 = tpu.reciprocal %25 : vector<8x1xf32> -> vector<8x1xf32>
    %29 = vector.broadcast %28 : vector<8x1xf32> to vector<8x8xf32>
    %30 = arith.mulf %27, %29 : vector<8x8xf32>
    %c0_14 = arith.constant 0 : index
    %c0_15 = arith.constant 0 : index
    %31 = vector.load %arg14[%c0_14, %c0_15] : memref<8x32xf32, #tpu.memory_space<vmem>>, vector<8x8xf32>
    tpu.vector_store %arg14[%c0_14, %c0_15], %30 {strides = array<i32>} : memref<8x32xf32, #tpu.memory_space<vmem>>, vector<8x8xf32>,
    %32 = vector.extract_strided_slice %9 {offsets = [0, 8], sizes = [8, 8], strides = [1, 1]} : vector<8x32xf32> to vector<8x8xf32>
    %c0_16 = arith.constant 0 : index
    %c8 = arith.constant 8 : index
    %33 = vector.load %arg12[%c0_16, %c8] : memref<16x32xf32, #tpu.memory_space<vmem>>, vector<16x8xf32>
    %cst_17 = arith.constant dense<0.000000e+00> : vector<8x16xf32>
    %34 = tpu.matmul %32, %33, %cst_17 {dimension_numbers = #tpu.dot_dimension_numbers<[1], [1], [0], [0], [0, 0, 1, 0], [], []>} : vector<8x8xf32>, vector<16x8xf32>, vector<8x16xf32> -> vector<8x16xf32>
    %cst_18 = arith.constant 0.353553385 : f32
    %35 = vector.broadcast %cst_18 : f32 to vector<8x16xf32>
    %36 = arith.mulf %34, %35 : vector<8x16xf32>
    %37 = vector.broadcast %11 : vector<1x16xf32> to vector<8x16xf32>
    %38 = arith.addf %36, %37 : vector<8x16xf32>
    %cst_19 = arith.constant dense<0xFF800000> : vector<8xf32>
    %39 = vector.multi_reduction <maximumf>, %38, %cst_19 [1] : vector<8x16xf32> to vector<8xf32>
    %40 = vector.shape_cast %39 : vector<8xf32> to vector<8x1xf32>
    %41 = vector.broadcast %40 : vector<8x1xf32> to vector<8x16xf32>
    %42 = arith.subf %38, %41 : vector<8x16xf32>
    %43 = math.exp %42 : vector<8x16xf32>
    %cst_20 = arith.constant dense<0.000000e+00> : vector<8xf32>
    %44 = vector.multi_reduction <add>, %43, %cst_20 [1] : vector<8x16xf32> to vector<8xf32>
    %45 = vector.shape_cast %44 : vector<8xf32> to vector<8x1xf32>
    %c0_21 = arith.constant 0 : index
    %c8_22 = arith.constant 8 : index
    %46 = vector.load %arg13[%c0_21, %c8_22] : memref<16x32xf32, #tpu.memory_space<vmem>>, vector<16x8xf32>
    %cst_23 = arith.constant dense<0.000000e+00> : vector<8x8xf32>
    %47 = tpu.matmul %43, %46, %cst_23 {dimension_numbers = #tpu.dot_dimension_numbers<[1], [0], [0], [1], [0, 0, 1, 1], [], []>} : vector<8x16xf32>, vector<16x8xf32>, vector<8x8xf32> -> vector<8x8xf32>
    %48 = tpu.reciprocal %45 : vector<8x1xf32> -> vector<8x1xf32>
    %49 = vector.broadcast %48 : vector<8x1xf32> to vector<8x8xf32>
    %50 = arith.mulf %47, %49 : vector<8x8xf32>
    %c0_24 = arith.constant 0 : index
    %c8_25 = arith.constant 8 : index
    %51 = vector.load %arg14[%c0_24, %c8_25] : memref<8x32xf32, #tpu.memory_space<vmem>>, vector<8x8xf32>
    tpu.vector_store %arg14[%c0_24, %c8_25], %50 {strides = array<i32>} : memref<8x32xf32, #tpu.memory_space<vmem>>, vector<8x8xf32>,
    %52 = vector.extract_strided_slice %9 {offsets = [0, 16], sizes = [8, 8], strides = [1, 1]} : vector<8x32xf32> to vector<8x8xf32>
    %c0_26 = arith.constant 0 : index
    %c16 = arith.constant 16 : index
    %53 = vector.load %arg12[%c0_26, %c16] : memref<16x32xf32, #tpu.memory_space<vmem>>, vector<16x8xf32>
    %cst_27 = arith.constant dense<0.000000e+00> : vector<8x16xf32>
    %54 = tpu.matmul %52, %53, %cst_27 {dimension_numbers = #tpu.dot_dimension_numbers<[1], [1], [0], [0], [0, 0, 1, 0], [], []>} : vector<8x8xf32>, vector<16x8xf32>, vector<8x16xf32> -> vector<8x16xf32>
    %cst_28 = arith.constant 0.353553385 : f32
    %55 = vector.broadcast %cst_28 : f32 to vector<8x16xf32>
    %56 = arith.mulf %54, %55 : vector<8x16xf32>
    %57 = vector.broadcast %11 : vector<1x16xf32> to vector<8x16xf32>
    %58 = arith.addf %56, %57 : vector<8x16xf32>
    %cst_29 = arith.constant dense<0xFF800000> : vector<8xf32>
    %59 = vector.multi_reduction <maximumf>, %58, %cst_29 [1] : vector<8x16xf32> to vector<8xf32>
    %60 = vector.shape_cast %59 : vector<8xf32> to vector<8x1xf32>
    %61 = vector.broadcast %60 : vector<8x1xf32> to vector<8x16xf32>
    %62 = arith.subf %58, %61 : vector<8x16xf32>
    %63 = math.exp %62 : vector<8x16xf32>
    %cst_30 = arith.constant dense<0.000000e+00> : vector<8xf32>
    %64 = vector.multi_reduction <add>, %63, %cst_30 [1] : vector<8x16xf32> to vector<8xf32>
    %65 = vector.shape_cast %64 : vector<8xf32> to vector<8x1xf32>
    %c0_31 = arith.constant 0 : index
    %c16_32 = arith.constant 16 : index
    %66 = vector.load %arg13[%c0_31, %c16_32] : memref<16x32xf32, #tpu.memory_space<vmem>>, vector<16x8xf32>
    %cst_33 = arith.constant dense<0.000000e+00> : vector<8x8xf32>
    %67 = tpu.matmul %63, %66, %cst_33 {dimension_numbers = #tpu.dot_dimension_numbers<[1], [0], [0], [1], [0, 0, 1, 1], [], []>} : vector<8x16xf32>, vector<16x8xf32>, vector<8x8xf32> -> vector<8x8xf32>
    %68 = tpu.reciprocal %65 : vector<8x1xf32> -> vector<8x1xf32>
    %69 = vector.broadcast %68 : vector<8x1xf32> to vector<8x8xf32>
    %70 = arith.mulf %67, %69 : vector<8x8xf32>
    %c0_34 = arith.constant 0 : index
    %c16_35 = arith.constant 16 : index
    %71 = vector.load %arg14[%c0_34, %c16_35] : memref<8x32xf32, #tpu.memory_space<vmem>>, vector<8x8xf32>
    tpu.vector_store %arg14[%c0_34, %c16_35], %70 {strides = array<i32>} : memref<8x32xf32, #tpu.memory_space<vmem>>, vector<8x8xf32>,
    %72 = vector.extract_strided_slice %9 {offsets = [0, 24], sizes = [8, 8], strides = [1, 1]} : vector<8x32xf32> to vector<8x8xf32>
    %c0_36 = arith.constant 0 : index
    %c24 = arith.constant 24 : index
    %73 = vector.load %arg12[%c0_36, %c24] : memref<16x32xf32, #tpu.memory_space<vmem>>, vector<16x8xf32>
    %cst_37 = arith.constant dense<0.000000e+00> : vector<8x16xf32>
    %74 = tpu.matmul %72, %73, %cst_37 {dimension_numbers = #tpu.dot_dimension_numbers<[1], [1], [0], [0], [0, 0, 1, 0], [], []>} : vector<8x8xf32>, vector<16x8xf32>, vector<8x16xf32> -> vector<8x16xf32>
    %cst_38 = arith.constant 0.353553385 : f32
    %75 = vector.broadcast %cst_38 : f32 to vector<8x16xf32>
    %76 = arith.mulf %74, %75 : vector<8x16xf32>
    %77 = vector.broadcast %11 : vector<1x16xf32> to vector<8x16xf32>
    %78 = arith.addf %76, %77 : vector<8x16xf32>
    %cst_39 = arith.constant dense<0xFF800000> : vector<8xf32>
    %79 = vector.multi_reduction <maximumf>, %78, %cst_39 [1] : vector<8x16xf32> to vector<8xf32>
    %80 = vector.shape_cast %79 : vector<8xf32> to vector<8x1xf32>
    %81 = vector.broadcast %80 : vector<8x1xf32> to vector<8x16xf32>
    %82 = arith.subf %78, %81 : vector<8x16xf32>
    %83 = math.exp %82 : vector<8x16xf32>
    %cst_40 = arith.constant dense<0.000000e+00> : vector<8xf32>
    %84 = vector.multi_reduction <add>, %83, %cst_40 [1] : vector<8x16xf32> to vector<8xf32>
    %85 = vector.shape_cast %84 : vector<8xf32> to vector<8x1xf32>
    %c0_41 = arith.constant 0 : index
    %c24_42 = arith.constant 24 : index
    %86 = vector.load %arg13[%c0_41, %c24_42] : memref<16x32xf32, #tpu.memory_space<vmem>>, vector<16x8xf32>
    %cst_43 = arith.constant dense<0.000000e+00> : vector<8x8xf32>
    %87 = tpu.matmul %83, %86, %cst_43 {dimension_numbers = #tpu.dot_dimension_numbers<[1], [0], [0], [1], [0, 0, 1, 1], [], []>} : vector<8x16xf32>, vector<16x8xf32>, vector<8x8xf32> -> vector<8x8xf32>
    %88 = tpu.reciprocal %85 : vector<8x1xf32> -> vector<8x1xf32>
    %89 = vector.broadcast %88 : vector<8x1xf32> to vector<8x8xf32>
    %90 = arith.mulf %87, %89 : vector<8x8xf32>
    %c0_44 = arith.constant 0 : index
    %c24_45 = arith.constant 24 : index
    %91 = vector.load %arg14[%c0_44, %c24_45] : memref<8x32xf32, #tpu.memory_space<vmem>>, vector<8x8xf32>
    tpu.vector_store %arg14[%c0_44, %c24_45], %90 {strides = array<i32>} : memref<8x32xf32, #tpu.memory_space<vmem>>, vector<8x8xf32>,
    %c0_46 = arith.constant 0 : index
    %c0_47 = arith.constant 0 : index
    %92 = vector.load %arg14[%c0_46, %c0_47] : memref<8x32xf32, #tpu.memory_space<vmem>>, vector<8x32xf32>
    %c0_48 = arith.constant 0 : index
    %c0_49 = arith.constant 0 : index
    %93 = vector.load %arg8[%c0_48, %c0_49] : memref<32x32xf32, #tpu.memory_space<vmem>>, vector<32x32xf32>
    %cst_50 = arith.constant dense<0.000000e+00> : vector<8x32xf32>
    %94 = tpu.matmul %92, %93, %cst_50 {dimension_numbers = #tpu.dot_dimension_numbers<[1], [0], [0], [1], [0, 0, 1, 1], [], []>} : vector<8x32xf32>, vector<32x32xf32>, vector<8x32xf32> -> vector<8x32xf32>
    %c0_51 = arith.constant 0 : index
    %c0_52 = arith.constant 0 : index
    %95 = vector.load %arg9[%c0_51, %c0_52] : memref<1x32xf32, #tpu.memory_space<vmem>>, vector<1x32xf32>
    %96 = vector.broadcast %95 : vector<1x32xf32> to vector<8x32xf32>
    %97 = arith.addf %94, %96 : vector<8x32xf32>
    %98 = arith.addf %7, %97 : vector<8x32xf32>
    %c0_53 = arith.constant 0 : index
    %c0_54 = arith.constant 0 : index
    %c0_55 = arith.constant 0 : index
    %99 = vector.load %arg10[%c0_53, %c0_54, %c0_55] : memref<1x8x32xf32, #tpu.memory_space<vmem>>, vector<1x8x32xf32>
    %100 = vector.shape_cast %99 : vector<1x8x32xf32> to vector<8x32xf32>
    %101 = vector.shape_cast %98 : vector<8x32xf32> to vector<1x8x32xf32>
    tpu.vector_store %arg10[%c0_53, %c0_54, %c0_55], %101 {strides = array<i32>} : memref<1x8x32xf32, #tpu.memory_space<vmem>>, vector<1x8x32xf32>,
    return
  }
  func.func @transform_0(%arg0: i32, %arg1: i32) -> (i32, i32, i32) {
    %c0_i32 = arith.constant 0 : i32
    %c0_i32_0 = arith.constant 0 : i32
    %c0_i32_1 = arith.constant 0 : i32
    return %arg0, %c0_i32, %c0_i32_0 : i32, i32, i32
  }
  func.func @transform_1(%arg0: i32, %arg1: i32) -> (i32, i32, i32) {
    %c0_i32 = arith.constant 0 : i32
    %c0_i32_0 = arith.constant 0 : i32
    %c0_i32_1 = arith.constant 0 : i32
    return %arg0, %c0_i32, %c0_i32_0 : i32, i32, i32
  }
  func.func @transform_2(%arg0: i32, %arg1: i32) -> (i32, i32) {
    %c0_i32 = arith.constant 0 : i32
    %c0_i32_0 = arith.constant 0 : i32
    %c0_i32_1 = arith.constant 0 : i32
    return %c0_i32, %c0_i32_0 : i32, i32
  }
  func.func @transform_3(%arg0: i32, %arg1: i32) -> (i32, i32) {
    %c0_i32 = arith.constant 0 : i32
    %c0_i32_0 = arith.constant 0 : i32
    %c0_i32_1 = arith.constant 0 : i32
    return %c0_i32, %c0_i32_0 : i32, i32
  }
  func.func @transform_4(%arg0: i32, %arg1: i32) -> (i32, i32) {
    %c0_i32 = arith.constant 0 : i32
    %c0_i32_0 = arith.constant 0 : i32
    %c0_i32_1 = arith.constant 0 : i32
    return %c0_i32, %c0_i32_0 : i32, i32
  }
  func.func @transform_5(%arg0: i32, %arg1: i32) -> (i32, i32) {
    %c0_i32 = arith.constant 0 : i32
    %c0_i32_0 = arith.constant 0 : i32
    %c0_i32_1 = arith.constant 0 : i32
    return %c0_i32, %c0_i32_0 : i32, i32
  }
  func.func @transform_6(%arg0: i32, %arg1: i32) -> (i32, i32) {
    %c0_i32 = arith.constant 0 : i32
    %c0_i32_0 = arith.constant 0 : i32
    %c0_i32_1 = arith.constant 0 : i32
    return %c0_i32, %c0_i32_0 : i32, i32
  }
  func.func @transform_7(%arg0: i32, %arg1: i32) -> (i32, i32) {
    %c0_i32 = arith.constant 0 : i32
    %c0_i32_0 = arith.constant 0 : i32
    %c0_i32_1 = arith.constant 0 : i32
    return %c0_i32, %c0_i32_0 : i32, i32
  }
  func.func @transform_8(%arg0: i32, %arg1: i32) -> (i32, i32, i32) {
    %c0_i32 = arith.constant 0 : i32
    %c0_i32_0 = arith.constant 0 : i32
    return %arg0, %arg1, %c0_i32 : i32, i32, i32
  }
}

module attributes {stable_mosaic.version = 11 : i64} {
  func.func @_attn_kernel(%arg0: i32, %arg1: i32, %arg2: memref<1x16x32xf32, #tpu.memory_space<vmem>>, %arg3: memref<1x1x16xf32, #tpu.memory_space<vmem>>, %arg4: memref<1x32xf32, #tpu.memory_space<vmem>>, %arg5: memref<1x32xf32, #tpu.memory_space<vmem>>, %arg6: memref<32x96xf32, #tpu.memory_space<vmem>>, %arg7: memref<1x96xf32, #tpu.memory_space<vmem>>, %arg8: memref<32x32xf32, #tpu.memory_space<vmem>>, %arg9: memref<1x32xf32, #tpu.memory_space<vmem>>, %arg10: memref<1x8x32xf32, #tpu.memory_space<vmem>>, %arg11: memref<16x32xf32, #tpu.memory_space<vmem>>, %arg12: memref<16x32xf32, #tpu.memory_space<vmem>>, %arg13: memref<16x32xf32, #tpu.memory_space<vmem>>, %arg14: memref<8x32xf32, #tpu.memory_space<vmem>>) attributes {dimension_semantics = [#tpu.dimension_semantics<parallel>, #tpu.dimension_semantics<arbitrary>], iteration_bounds = array<i64: 2, 2>, scalar_prefetch = 0 : i64, scratch_operands = 4 : i64, tpu.core_type = #tpu.core_type<tc>, window_params = [{transform_indices = @transform_0, window_bounds = array<i64: 1, 16, 32>}, {transform_indices = @transform_1, window_bounds = array<i64: 1, 1, 16>}, {pipeline_mode = #tpu.pipeline_mode<synchronous>, transform_indices = @transform_2, window_bounds = array<i64: 1, 32>}, {pipeline_mode = #tpu.pipeline_mode<synchronous>, transform_indices = @transform_3, window_bounds = array<i64: 1, 32>}, {pipeline_mode = #tpu.pipeline_mode<synchronous>, transform_indices = @transform_4, window_bounds = array<i64: 32, 96>}, {pipeline_mode = #tpu.pipeline_mode<synchronous>, transform_indices = @transform_5, window_bounds = array<i64: 1, 96>}, {pipeline_mode = #tpu.pipeline_mode<synchronous>, transform_indices = @transform_6, window_bounds = array<i64: 32, 32>}, {pipeline_mode = #tpu.pipeline_mode<synchronous>, transform_indices = @transform_7, window_bounds = array<i64: 1, 32>}, {transform_indices = @transform_8, window_bounds = array<i64: 1, 8, 32>}]} {
    %c0_i32 = arith.constant 0 : i32
    %0 = arith.cmpi eq, %arg1, %c0_i32 : i32
    %1 = arith.extui %0 : i1 to i32
    %c0_i32_0 = arith.constant 0 : i32
    %2 = arith.cmpi ne, %1, %c0_i32_0 : i32
    scf.if %2 {
      %c0_56 = arith.constant 0 : index
      %c0_57 = arith.constant 0 : index
      %c0_58 = arith.constant 0 : index
      %102 = vector.load %arg2[%c0_56, %c0_57, %c0_58] : memref<1x16x32xf32, #tpu.memory_space<vmem>>, vector<1x16x32xf32>
      %103 = vector.shape_cast %102 : vector<1x16x32xf32> to vector<16x32xf32>
      %c0_59 = arith.constant 0 : index
      %c0_60 = arith.constant 0 : index
      %104 = vector.load %arg4[%c0_59, %c0_60] : memref<1x32xf32, #tpu.memory_space<vmem>>, vector<1x32xf32>
      %c0_61 = arith.constant 0 : index
      %c0_62 = arith.constant 0 : index
      %105 = vector.load %arg5[%c0_61, %c0_62] : memref<1x32xf32, #tpu.memory_space<vmem>>, vector<1x32xf32>
      %cst_63 = arith.constant dense<0.000000e+00> : vector<16xf32>
      %106 = vector.multi_reduction <add>, %103, %cst_63 [1] : vector<16x32xf32> to vector<16xf32>
      %107 = vector.shape_cast %106 : vector<16xf32> to vector<16x1xf32>
      %cst_64 = arith.constant 3.200000e+01 : f32
      %108 = vector.broadcast %cst_64 : f32 to vector<16x1xf32>
      %109 = arith.divf %107, %108 : vector<16x1xf32>
      %110 = vector.broadcast %109 : vector<16x1xf32> to vector<16x32xf32>
      %111 = arith.subf %103, %110 : vector<16x32xf32>
      %112 = arith.mulf %111, %111 : vector<16x32xf32>
      %cst_65 = arith.constant dense<0.000000e+00> : vector<16xf32>
      %113 = vector.multi_reduction <add>, %112, %cst_65 [1] : vector<16x32xf32> to vector<16xf32>
      %114 = vector.shape_cast %113 : vector<16xf32> to vector<16x1xf32>
      %cst_66 = arith.constant 3.200000e+01 : f32
      %115 = vector.broadcast %cst_66 : f32 to vector<16x1xf32>
      %116 = arith.divf %114, %115 : vector<16x1xf32>
      %cst_67 = arith.constant 9.99999996E-13 : f32
      %117 = vector.broadcast %cst_67 : f32 to vector<16x1xf32>
      %118 = arith.addf %116, %117 : vector<16x1xf32>
      %119 = math.rsqrt %118 : vector<16x1xf32>
      %120 = vector.broadcast %119 : vector<16x1xf32> to vector<16x32xf32>
      %121 = arith.mulf %111, %120 : vector<16x32xf32>
      %122 = vector.broadcast %104 : vector<1x32xf32> to vector<16x32xf32>
      %123 = arith.mulf %121, %122 : vector<16x32xf32>
      %124 = vector.broadcast %105 : vector<1x32xf32> to vector<16x32xf32>
      %125 = arith.addf %123, %124 : vector<16x32xf32>
      %c0_68 = arith.constant 0 : index
      %c0_69 = arith.constant 0 : index
      %126 = vector.load %arg6[%c0_68, %c0_69] : memref<32x96xf32, #tpu.memory_space<vmem>>, vector<32x96xf32>
      %cst_70 = arith.constant dense<0.000000e+00> : vector<16x96xf32>
      %127 = tpu.matmul %125, %126, %cst_70 {dimension_numbers = #tpu.dot_dimension_numbers<[1], [0], [0], [1], [0, 0, 1, 1], [], []>} : vector<16x32xf32>, vector<32x96xf32>, vector<16x96xf32> -> vector<16x96xf32>
      %c0_71 = arith.constant 0 : index
      %c0_72 = arith.constant 0 : index
      %128 = vector.load %arg7[%c0_71, %c0_72] : memref<1x96xf32, #tpu.memory_space<vmem>>, vector<1x96xf32>
      %129 = vector.broadcast %128 : vector<1x96xf32> to vector<16x96xf32>
      %130 = arith.addf %127, %129 : vector<16x96xf32>
      %131 = vector.extract_strided_slice %130 {offsets = [0, 0], sizes = [16, 32], strides = [1, 1]} : vector<16x96xf32> to vector<16x32xf32>
      %c0_73 = arith.constant 0 : index
      %c0_74 = arith.constant 0 : index
      %132 = vector.load %arg11[%c0_73, %c0_74] : memref<16x32xf32, #tpu.memory_space<vmem>>, vector<16x32xf32>
      tpu.vector_store %arg11[%c0_73, %c0_74], %131 {strides = array<i32>} : memref<16x32xf32, #tpu.memory_space<vmem>>, vector<16x32xf32>,
      %133 = vector.extract_strided_slice %130 {offsets = [0, 32], sizes = [16, 32], strides = [1, 1]} : vector<16x96xf32> to vector<16x32xf32>
      %c0_75 = arith.constant 0 : index
      %c0_76 = arith.constant 0 : index
      %134 = vector.load %arg12[%c0_75, %c0_76] : memref<16x32xf32, #tpu.memory_space<vmem>>, vector<16x32xf32>
      tpu.vector_store %arg12[%c0_75, %c0_76], %133 {strides = array<i32>} : memref<16x32xf32, #tpu.memory_space<vmem>>, vector<16x32xf32>,
      %135 = vector.extract_strided_slice %130 {offsets = [0, 64], sizes = [16, 32], strides = [1, 1]} : vector<16x96xf32> to vector<16x32xf32>
      %c0_77 = arith.constant 0 : index
      %c0_78 = arith.constant 0 : index
      %136 = vector.load %arg13[%c0_77, %c0_78] : memref<16x32xf32, #tpu.memory_space<vmem>>, vector<16x32xf32>
      tpu.vector_store %arg13[%c0_77, %c0_78], %135 {strides = array<i32>} : memref<16x32xf32, #tpu.memory_space<vmem>>, vector<16x32xf32>,
    } else {
    }
    %c8_i32 = arith.constant 8 : i32
    %3 = arith.muli %arg1, %c8_i32 : i32
    %4 = tpu.assume_multiple %3, 8 : i32
    %c0 = arith.constant 0 : index
    %5 = arith.index_cast %4 : i32 to index
    %c0_1 = arith.constant 0 : index
    %6 = vector.load %arg2[%c0, %5, %c0_1] : memref<1x16x32xf32, #tpu.memory_space<vmem>>, vector<1x8x32xf32>
    %7 = vector.shape_cast %6 : vector<1x8x32xf32> to vector<8x32xf32>
    %8 = arith.index_cast %4 : i32 to index
    %c0_2 = arith.constant 0 : index
    %9 = vector.load %arg11[%8, %c0_2] : memref<16x32xf32, #tpu.memory_space<vmem>>, vector<8x32xf32>
    %c0_3 = arith.constant 0 : index
    %c0_4 = arith.constant 0 : index
    %c0_5 = arith.constant 0 : index
    %10 = vector.load %arg3[%c0_3, %c0_4, %c0_5] : memref<1x1x16xf32, #tpu.memory_space<vmem>>, vector<1x1x16xf32>
    %11 = vector.shape_cast %10 : vector<1x1x16xf32> to vector<1x16xf32>
    %12 = vector.extract_strided_slice %9 {offsets = [0, 0], sizes = [8, 8], strides = [1, 1]} : vector<8x32xf32> to vector<8x8xf32>
    %c0_6 = arith.constant 0 : index
    %c0_7 = arith.constant 0 : index
    %13 = vector.load %arg12[%c0_6, %c0_7] : memref<16x32xf32, #tpu.memory_space<vmem>>, vector<16x8xf32>
    %cst = arith.constant dense<0.000000e+00> : vector<8x16xf32>
    %14 = tpu.matmul %12, %13, %cst {dimension_numbers = #tpu.dot_dimension_numbers<[1], [1], [0], [0], [0, 0, 1, 0], [], []>} : vector<8x8xf32>, vector<16x8xf32>, vector<8x16xf32> -> vector<8x16xf32>
    %cst_8 = arith.constant 0.353553385 : f32
    %15 = vector.broadcast %cst_8 : f32 to vector<8x16xf32>
    %16 = arith.mulf %14, %15 : vector<8x16xf32>
    %17 = vector.broadcast %11 : vector<1x16xf32> to vector<8x16xf32>
    %18 = arith.addf %16, %17 : vector<8x16xf32>
    %cst_9 = arith.constant dense<0xFF800000> : vector<8xf32>
    %19 = vector.multi_reduction <maximumf>, %18, %cst_9 [1] : vector<8x16xf32> to vector<8xf32>
    %20 = vector.shape_cast %19 : vector<8xf32> to vector<8x1xf32>
    %21 = vector.broadcast %20 : vector<8x1xf32> to vector<8x16xf32>
    %22 = arith.subf %18, %21 : vector<8x16xf32>
    %23 = math.exp %22 : vector<8x16xf32>
    %cst_10 = arith.constant dense<0.000000e+00> : vector<8xf32>
    %24 = vector.multi_reduction <add>, %23, %cst_10 [1] : vector<8x16xf32> to vector<8xf32>
    %25 = vector.shape_cast %24 : vector<8xf32> to vector<8x1xf32>
    %c0_11 = arith.constant 0 : index
    %c0_12 = arith.constant 0 : index
    %26 = vector.load %arg13[%c0_11, %c0_12] : memref<16x32xf32, #tpu.memory_space<vmem>>, vector<16x8xf32>
    %cst_13 = arith.constant dense<0.000000e+00> : vector<8x8xf32>
    %27 = tpu.matmul %23, %26, %cst_13 {dimension_numbers = #tpu.dot_dimension_numbers<[1], [0], [0], [1], [0, 0, 1, 1], [], []>} : vector<8x16xf32>, vector<16x8xf32>, vector<8x8xf32> -> vector<8x8xf32>
    %28 = tpu.reciprocal %25 : vector<8x1xf32> -> vector<8x1xf32>
    %29 = vector.broadcast %28 : vector<8x1xf32> to vector<8x8xf32>
    %30 = arith.mulf %27, %29 : vector<8x8xf32>
    %c0_14 = arith.constant 0 : index
    %c0_15 = arith.constant 0 : index
    %31 = vector.load %arg14[%c0_14, %c0_15] : memref<8x32xf32, #tpu.memory_space<vmem>>, vector<8x8xf32>
    tpu.vector_store %arg14[%c0_14, %c0_15], %30 {strides = array<i32>} : memref<8x32xf32, #tpu.memory_space<vmem>>, vector<8x8xf32>,
    %32 = vector.extract_strided_slice %9 {offsets = [0, 8], sizes = [8, 8], strides = [1, 1]} : vector<8x32xf32> to vector<8x8xf32>
    %c0_16 = arith.constant 0 : index
    %c8 = arith.constant 8 : index
    %33 = vector.load %arg12[%c0_16, %c8] : memref<16x32xf32, #tpu.memory_space<vmem>>, vector<16x8xf32>
    %cst_17 = arith.constant dense<0.000000e+00> : vector<8x16xf32>
    %34 = tpu.matmul %32, %33, %cst_17 {dimension_numbers = #tpu.dot_dimension_numbers<[1], [1], [0], [0], [0, 0, 1, 0], [], []>} : vector<8x8xf32>, vector<16x8xf32>, vector<8x16xf32> -> vector<8x16xf32>
    %cst_18 = arith.constant 0.353553385 : f32
    %35 = vector.broadcast %cst_18 : f32 to vector<8x16xf32>
    %36 = arith.mulf %34, %35 : vector<8x16xf32>
    %37 = vector.broadcast %11 : vector<1x16xf32> to vector<8x16xf32>
    %38 = arith.addf %36, %37 : vector<8x16xf32>
    %cst_19 = arith.constant dense<0xFF800000> : vector<8xf32>
    %39 = vector.multi_reduction <maximumf>, %38, %cst_19 [1] : vector<8x16xf32> to vector<8xf32>
    %40 = vector.shape_cast %39 : vector<8xf32> to vector<8x1xf32>
    %41 = vector.broadcast %40 : vector<8x1xf32> to vector<8x16xf32>
    %42 = arith.subf %38, %41 : vector<8x16xf32>
    %43 = math.exp %42 : vector<8x16xf32>
    %cst_20 = arith.constant dense<0.000000e+00> : vector<8xf32>
    %44 = vector.multi_reduction <add>, %43, %cst_20 [1] : vector<8x16xf32> to vector<8xf32>
    %45 = vector.shape_cast %44 : vector<8xf32> to vector<8x1xf32>
    %c0_21 = arith.constant 0 : index
    %c8_22 = arith.constant 8 : index
    %46 = vector.load %arg13[%c0_21, %c8_22] : memref<16x32xf32, #tpu.memory_space<vmem>>, vector<16x8xf32>
    %cst_23 = arith.constant dense<0.000000e+00> : vector<8x8xf32>
    %47 = tpu.matmul %43, %46, %cst_23 {dimension_numbers = #tpu.dot_dimension_numbers<[1], [0], [0], [1], [0, 0, 1, 1], [], []>} : vector<8x16xf32>, vector<16x8xf32>, vector<8x8xf32> -> vector<8x8xf32>
    %48 = tpu.reciprocal %45 : vector<8x1xf32> -> vector<8x1xf32>
    %49 = vector.broadcast %48 : vector<8x1xf32> to vector<8x8xf32>
    %50 = arith.mulf %47, %49 : vector<8x8xf32>
    %c0_24 = arith.constant 0 : index
    %c8_25 = arith.constant 8 : index
    %51 = vector.load %arg14[%c0_24, %c8_25] : memref<8x32xf32, #tpu.memory_space<vmem>>, vector<8x8xf32>
    tpu.vector_store %arg14[%c0_24, %c8_25], %50 {strides = array<i32>} : memref<8x32xf32, #tpu.memory_space<vmem>>, vector<8x8xf32>,
    %52 = vector.extract_strided_slice %9 {offsets = [0, 16], sizes = [8, 8], strides = [1, 1]} : vector<8x32xf32> to vector<8x8xf32>
    %c0_26 = arith.constant 0 : index
    %c16 = arith.constant 16 : index
    %53 = vector.load %arg12[%c0_26, %c16] : memref<16x32xf32, #tpu.memory_space<vmem>>, vector<16x8xf32>
    %cst_27 = arith.constant dense<0.000000e+00> : vector<8x16xf32>
    %54 = tpu.matmul %52, %53, %cst_27 {dimension_numbers = #tpu.dot_dimension_numbers<[1], [1], [0], [0], [0, 0, 1, 0], [], []>} : vector<8x8xf32>, vector<16x8xf32>, vector<8x16xf32> -> vector<8x16xf32>
    %cst_28 = arith.constant 0.353553385 : f32
    %55 = vector.broadcast %cst_28 : f32 to vector<8x16xf32>
    %56 = arith.mulf %54, %55 : vector<8x16xf32>
    %57 = vector.broadcast %11 : vector<1x16xf32> to vector<8x16xf32>
    %58 = arith.addf %56, %57 : vector<8x16xf32>
    %cst_29 = arith.constant dense<0xFF800000> : vector<8xf32>
    %59 = vector.multi_reduction <maximumf>, %58, %cst_29 [1] : vector<8x16xf32> to vector<8xf32>
    %60 = vector.shape_cast %59 : vector<8xf32> to vector<8x1xf32>
    %61 = vector.broadcast %60 : vector<8x1xf32> to vector<8x16xf32>
    %62 = arith.subf %58, %61 : vector<8x16xf32>
    %63 = math.exp %62 : vector<8x16xf32>
    %cst_30 = arith.constant dense<0.000000e+00> : vector<8xf32>
    %64 = vector.multi_reduction <add>, %63, %cst_30 [1] : vector<8x16xf32> to vector<8xf32>
    %65 = vector.shape_cast %64 : vector<8xf32> to vector<8x1xf32>
    %c0_31 = arith.constant 0 : index
    %c16_32 = arith.constant 16 : index
    %66 = vector.load %arg13[%c0_31, %c16_32] : memref<16x32xf32, #tpu.memory_space<vmem>>, vector<16x8xf32>
    %cst_33 = arith.constant dense<0.000000e+00> : vector<8x8xf32>
    %67 = tpu.matmul %63, %66, %cst_33 {dimension_numbers = #tpu.dot_dimension_numbers<[1], [0], [0], [1], [0, 0, 1, 1], [], []>} : vector<8x16xf32>, vector<16x8xf32>, vector<8x8xf32> -> vector<8x8xf32>
    %68 = tpu.reciprocal %65 : vector<8x1xf32> -> vector<8x1xf32>
    %69 = vector.broadcast %68 : vector<8x1xf32> to vector<8x8xf32>
    %70 = arith.mulf %67, %69 : vector<8x8xf32>
    %c0_34 = arith.constant 0 : index
    %c16_35 = arith.constant 16 : index
    %71 = vector.load %arg14[%c0_34, %c16_35] : memref<8x32xf32, #tpu.memory_space<vmem>>, vector<8x8xf32>
    tpu.vector_store %arg14[%c0_34, %c16_35], %70 {strides = array<i32>} : memref<8x32xf32, #tpu.memory_space<vmem>>, vector<8x8xf32>,
    %72 = vector.extract_strided_slice %9 {offsets = [0, 24], sizes = [8, 8], strides = [1, 1]} : vector<8x32xf32> to vector<8x8xf32>
    %c0_36 = arith.constant 0 : index
    %c24 = arith.constant 24 : index
    %73 = vector.load %arg12[%c0_36, %c24] : memref<16x32xf32, #tpu.memory_space<vmem>>, vector<16x8xf32>
    %cst_37 = arith.constant dense<0.000000e+00> : vector<8x16xf32>
    %74 = tpu.matmul %72, %73, %cst_37 {dimension_numbers = #tpu.dot_dimension_numbers<[1], [1], [0], [0], [0, 0, 1, 0], [], []>} : vector<8x8xf32>, vector<16x8xf32>, vector<8x16xf32> -> vector<8x16xf32>
    %cst_38 = arith.constant 0.353553385 : f32
    %75 = vector.broadcast %cst_38 : f32 to vector<8x16xf32>
    %76 = arith.mulf %74, %75 : vector<8x16xf32>
    %77 = vector.broadcast %11 : vector<1x16xf32> to vector<8x16xf32>
    %78 = arith.addf %76, %77 : vector<8x16xf32>
    %cst_39 = arith.constant dense<0xFF800000> : vector<8xf32>
    %79 = vector.multi_reduction <maximumf>, %78, %cst_39 [1] : vector<8x16xf32> to vector<8xf32>
    %80 = vector.shape_cast %79 : vector<8xf32> to vector<8x1xf32>
    %81 = vector.broadcast %80 : vector<8x1xf32> to vector<8x16xf32>
    %82 = arith.subf %78, %81 : vector<8x16xf32>
    %83 = math.exp %82 : vector<8x16xf32>
    %cst_40 = arith.constant dense<0.000000e+00> : vector<8xf32>
    %84 = vector.multi_reduction <add>, %83, %cst_40 [1] : vector<8x16xf32> to vector<8xf32>
    %85 = vector.shape_cast %84 : vector<8xf32> to vector<8x1xf32>
    %c0_41 = arith.constant 0 : index
    %c24_42 = arith.constant 24 : index
    %86 = vector.load %arg13[%c0_41, %c24_42] : memref<16x32xf32, #tpu.memory_space<vmem>>, vector<16x8xf32>
    %cst_43 = arith.constant dense<0.000000e+00> : vector<8x8xf32>
    %87 = tpu.matmul %83, %86, %cst_43 {dimension_numbers = #tpu.dot_dimension_numbers<[1], [0], [0], [1], [0, 0, 1, 1], [], []>} : vector<8x16xf32>, vector<16x8xf32>, vector<8x8xf32> -> vector<8x8xf32>
    %88 = tpu.reciprocal %85 : vector<8x1xf32> -> vector<8x1xf32>
    %89 = vector.broadcast %88 : vector<8x1xf32> to vector<8x8xf32>
    %90 = arith.mulf %87, %89 : vector<8x8xf32>
    %c0_44 = arith.constant 0 : index
    %c24_45 = arith.constant 24 : index
    %91 = vector.load %arg14[%c0_44, %c24_45] : memref<8x32xf32, #tpu.memory_space<vmem>>, vector<8x8xf32>
    tpu.vector_store %arg14[%c0_44, %c24_45], %90 {strides = array<i32>} : memref<8x32xf32, #tpu.memory_space<vmem>>, vector<8x8xf32>,
    %c0_46 = arith.constant 0 : index
    %c0_47 = arith.constant 0 : index
    %92 = vector.load %arg14[%c0_46, %c0_47] : memref<8x32xf32, #tpu.memory_space<vmem>>, vector<8x32xf32>
    %c0_48 = arith.constant 0 : index
    %c0_49 = arith.constant 0 : index
    %93 = vector.load %arg8[%c0_48, %c0_49] : memref<32x32xf32, #tpu.memory_space<vmem>>, vector<32x32xf32>
    %cst_50 = arith.constant dense<0.000000e+00> : vector<8x32xf32>
    %94 = tpu.matmul %92, %93, %cst_50 {dimension_numbers = #tpu.dot_dimension_numbers<[1], [0], [0], [1], [0, 0, 1, 1], [], []>} : vector<8x32xf32>, vector<32x32xf32>, vector<8x32xf32> -> vector<8x32xf32>
    %c0_51 = arith.constant 0 : index
    %c0_52 = arith.constant 0 : index
    %95 = vector.load %arg9[%c0_51, %c0_52] : memref<1x32xf32, #tpu.memory_space<vmem>>, vector<1x32xf32>
    %96 = vector.broadcast %95 : vector<1x32xf32> to vector<8x32xf32>
    %97 = arith.addf %94, %96 : vector<8x32xf32>
    %98 = arith.addf %7, %97 : vector<8x32xf32>
    %c0_53 = arith.constant 0 : index
    %c0_54 = arith.constant 0 : index
    %c0_55 = arith.constant 0 : index
    %99 = vector.load %arg10[%c0_53, %c0_54, %c0_55] : memref<1x8x32xf32, #tpu.memory_space<vmem>>, vector<1x8x32xf32>
    %100 = vector.shape_cast %99 : vector<1x8x32xf32> to vector<8x32xf32>
    %101 = vector.shape_cast %98 : vector<8x32xf32> to vector<1x8x32xf32>
    tpu.vector_store %arg10[%c0_53, %c0_54, %c0_55], %101 {strides = array<i32>} : memref<1x8x32xf32, #tpu.memory_space<vmem>>, vector<1x8x32xf32>,
    return
  }
  func.func @transform_0(%arg0: i32, %arg1: i32) -> (i32, i32, i32) {
    %c0_i32 = arith.constant 0 : i32
    %c0_i32_0 = arith.constant 0 : i32
    %c0_i32_1 = arith.constant 0 : i32
    return %arg0, %c0_i32, %c0_i32_0 : i32, i32, i32
  }
  func.func @transform_1(%arg0: i32, %arg1: i32) -> (i32, i32, i32) {
    %c0_i32 = arith.constant 0 : i32
    %c0_i32_0 = arith.constant 0 : i32
    %c0_i32_1 = arith.constant 0 : i32
    return %arg0, %c0_i32, %c0_i32_0 : i32, i32, i32
  }
  func.func @transform_2(%arg0: i32, %arg1: i32) -> (i32, i32) {
    %c0_i32 = arith.constant 0 : i32
    %c0_i32_0 = arith.constant 0 : i32
    %c0_i32_1 = arith.constant 0 : i32
    return %c0_i32, %c0_i32_0 : i32, i32
  }
  func.func @transform_3(%arg0: i32, %arg1: i32) -> (i32, i32) {
    %c0_i32 = arith.constant 0 : i32
    %c0_i32_0 = arith.constant 0 : i32
    %c0_i32_1 = arith.constant 0 : i32
    return %c0_i32, %c0_i32_0 : i32, i32
  }
  func.func @transform_4(%arg0: i32, %arg1: i32) -> (i32, i32) {
    %c0_i32 = arith.constant 0 : i32
    %c0_i32_0 = arith.constant 0 : i32
    %c0_i32_1 = arith.constant 0 : i32
    return %c0_i32, %c0_i32_0 : i32, i32
  }
  func.func @transform_5(%arg0: i32, %arg1: i32) -> (i32, i32) {
    %c0_i32 = arith.constant 0 : i32
    %c0_i32_0 = arith.constant 0 : i32
    %c0_i32_1 = arith.constant 0 : i32
    return %c0_i32, %c0_i32_0 : i32, i32
  }
  func.func @transform_6(%arg0: i32, %arg1: i32) -> (i32, i32) {
    %c0_i32 = arith.constant 0 : i32
    %c0_i32_0 = arith.constant 0 : i32
    %c0_i32_1 = arith.constant 0 : i32
    return %c0_i32, %c0_i32_0 : i32, i32
  }
  func.func @transform_7(%arg0: i32, %arg1: i32) -> (i32, i32) {
    %c0_i32 = arith.constant 0 : i32
    %c0_i32_0 = arith.constant 0 : i32
    %c0_i32_1 = arith.constant 0 : i32
    return %c0_i32, %c0_i32_0 : i32, i32
  }
  func.func @transform_8(%arg0: i32, %arg1: i32) -> (i32, i32, i32) {
    %c0_i32 = arith.constant 0 : i32
    %c0_i32_0 = arith.constant 0 : i32
    return %arg0, %arg1, %c0_i32 : i32, i32, i32
  }
}

</mosaic_0001>

<bundles_post_ra>
// kernel: tpu_custom_call.1
= control target key start
LH: loop header
LB: loop body
LE: loop exit
PB: predicated region body
PF: predicated region fallthrough
CT: control target
= control target key end

     0   :  { %s1961_s0 = inlined_call_operand.hbm [shape: f32[2,16,32], index: 0, kind: input, shape index: {}]   ;;  %s1962_s1 = inlined_call_operand.hbm [shape: f32[2,1,16], index: 1, kind: input, shape index: {}]   ;;  %s1963_s2 = inlined_call_operand.vmem [shape: f32[1,32], index: 2, kind: input, shape index: {}]   ;;  %s1964_s3 = inlined_call_operand.vmem [shape: f32[1,32], index: 3, kind: input, shape index: {}]   ;;  %s1965_s4 = inlined_call_operand.hbm [shape: f32[32,96], index: 4, kind: input, shape index: {}]   ;;  %s1966_s5 = inlined_call_operand.vmem [shape: f32[1,96], index: 5, kind: input, shape index: {}]   ;;  %s1967_s6 = inlined_call_operand.hbm [shape: f32[32,32], index: 6, kind: input, shape index: {}]   ;;  %s1968_s7 = inlined_call_operand.vmem [shape: f32[1,32], index: 7, kind: input, shape index: {}]   ;;  %s1969_s8 = inlined_call_operand.hbm [shape: f32[2,16,32], index: 8, kind: output, shape index: {}]  }
   0x1   :  { %1981 = sst [smem:[#allocation27_spill]] %s1961_s0 }
   0x2   :  { %1982 = sst [smem:[#allocation28_spill]] %s1964_s3 }
   0x3   :  { %1983 = sst [smem:[#allocation29_spill]] %s1965_s4 }
   0x4   :  { %1984 = sst [smem:[#allocation30_spill]] %s1966_s5 }
   0x5   :  { %1985 = sst [smem:[#allocation31_spill]] %s1967_s6 }
   0x6   :  { %1986 = sst [smem:[#allocation32_spill]] %s1968_s7 }
   0x7   :  { %1987 = sst [smem:[#allocation33_spill]] %s1969_s8 }
   0x8   :  { %13 = vsyncpa [#allocation7], 0 }
   0x9   :  { %15 = vsyncpa [#allocation7 + $0x1], 0 }
   0xa   :  { %16 = vsyncpa [#allocation10], 0 }
   0xb   :  { %18 = vsyncpa [#allocation10 + $0x1], 0 }
   0xc   :  { %19 = vsyncpa [#allocation13], 0 }
   0xd   :  { %20 = vsyncpa [#allocation8], 0 }
   0xe   :  { %22 = vsyncpa [#allocation8 + $0x1], 0  ;;  %s1650_s27 = smov 0   ;;  %s1652_s28 = smov 0  }
   0xf   :  { %s1654_s29 = smov 0   ;;  %s1656_s30 = smov 0  }
  0x10   :  { %s1658_s9 = smov 0   ;;  %s1660_s10 = smov 0  }
  0x11   :  { %s1662_s11 = smov 0   ;;  %s1664_s12 = smov 0  }
  0x12   :  { %s1666_s13 = smov 0   ;;  %s1668_s14 = smov 0  }
  0x13   :  { %s1670_s15 = smov 0  }
  0x14 LB: > { %1988 = sst [smem:[#allocation20_spill]] %s1550_s27  ;;  %s1704_s16 = sadd.s32 4294967295, %s1590_s15   ;;  %s1590_s15 = sphi %s1670_s15, %s28_s15   ;;  %s1586_s14 = sphi %s1668_s14, %s2027_s14   ;;  %s1582_s13 = sphi %s1666_s13, %s2026_s13   ;;  %s1578_s12 = sphi %s1664_s12, %s2025_s12   ;;  %s1574_s11 = sphi %s1662_s11, %s2016_s11   ;;  %s1570_s10 = sphi %s1660_s10, %s2024_s10   ;;  %s1566_s9 = sphi %s1658_s9, %s2023_s9   ;;  %s1562_s30 = sphi %s1656_s30, %s2022_s30   ;;  %s1558_s29 = sphi %s1654_s29, %s2021_s29   ;;  %s1554_s28 = sphi %s1652_s28, %s2020_s28   ;;  %s1550_s27 = sphi %s1650_s27, %s2019_s27  }
  0x15   : > { %1989 = sst [smem:[#allocation21_spill]] %s1578_s12  ;;  %s1111_s17 = sadd.s32 4294967294, %s1590_s15  }
  0x16   : > { %1990 = sst [smem:[#allocation22_spill]] %s1582_s13  ;;  %p60_p0 = scmp.ne.s32.totalorder %s1566_s9, %s1562_s30 }
  0x17   : > { %p61_p1 = scmp.eq.s32.totalorder %s1704_s16, 0  ;;  %p237_p2 = scmp.ne.s32.totalorder %s1558_s29, %s1554_s28 }
  0x18   : > { %p238_p4 = scmp.eq.s32.totalorder %s1704_s16, 3  ;;  %p243_p5 = scmp.ne.s32.totalorder %s1554_s28, %s1550_s27 }
  0x19   : > { %p1714_p3 = por %p61_p1, %p60_p0  ;;  %p244_p6 = scmp.eq.s32.totalorder %s1111_s17, 3 }
  0x1a   : > { %p1721_p7 = por %p238_p4, %p237_p2  ;;  %p1112_p8 = scmp.ge.s32.totalorder %s1590_s15, 1 }
  0x1b   : > { %p1726_p9 = por %p244_p6, %p243_p5  ;;  %p251_p10 = scmp.lt.s32.totalorder %s1590_s15, 5 }
  0x1c   : > { %s1992_s20 = scalar_select %p1721_p7, 1, 0 }
  0x1d   : > { %s1994_s21 = scalar_select %p1726_p9, 1, 0 }
  0x1e   : > { %1993 = sst [smem:[#allocation23_spill]] %s1992_s20  ;;  %p1734_p11 = pnand %p1112_p8, %p251_p10 }
  0x1f   : > { %1995 = sst [smem:[#allocation24_spill]] %s1994_s21  ;;  %s1592_s26 = smov [#allocation11]  }
  0x20   : > { %s1996_s4 = sld [smem:[#allocation29_spill]]  ;;  %p1169_p12 = pneg %p1734_p11 }
  0x21   : > { %s270_s30 = sshll.u32 %s1592_s26, 4  ;;  %s1998_s6 = sld [smem:[#allocation31_spill]]  ;;  %s271_s30 = int_to_ptr.vmem [resolvable:$true] %s270_s30 }
  0x22   : > { %p1170_p13 = pnand %p1169_p12, %p61_p1  ;;  %s1971_s18 = smov 128  }
  0x23   : > { %s1595_s26 = smov [#allocation12]   ;;  %s37_s17 = sadd.s32 1, %s1582_s13 }
  0x24   : > { %s287_s21 = sshll.u32 %s1595_s26, 4  ;;  %s40_s22 = sadd.s32 1, %s1586_s14  ;;  %s288_s21 = int_to_ptr.vmem [resolvable:$true] %s287_s21 }
  0x25   : > { %p38_p0 = scmp.ge.s32.totalorder %s37_s17, 2  ;;  %p54_p2 = scmp.ne.s32.totalorder %s1570_s10, %s1566_s9 }
  0x26   : > { %s268_s24 = sshll.u32 %s1996_s4, 4  ;;  %s1972_s4 = smov 8   ;;  %s269_s24 = int_to_ptr.hbm [resolvable:$true] %s268_s24 }
  0x27   : > { %s285_s23 = sshll.u32 %s1998_s6, 4  ;;  %s47_s6 = sadd.s32 1, %s1570_s10  ;;  %s286_s23 = int_to_ptr.hbm [resolvable:$true] %s285_s23 }
  0x28   : > { %1172 = dma.hbm_to_vmem [thread:$0]  (!%p1170_p13), %s269_s24, 512, %s271_s30, [#allocation10], %s1971_s18, %s1971_s18, %s1972_s4  }
  0x29   : > { %1175 = dma.hbm_to_vmem [thread:$0]  (!%p1170_p13), %s286_s23, 512, %s288_s21, [#allocation13], %s1971_s18, %s1971_s18, %s1972_s4  }
  0x2a   : > { %p55_p4 = scmp.eq.s32.totalorder %s1590_s15, 0  ;;  %s2029_s17 = smov (%p38_p0, %s37_s17), 0 }
  0x2b   : > { %1999 = sst [smem:[#allocation25_spill]] %s2029_s17  ;;  %s2031_s22 = smov (!%p38_p0, %s40_s22), %s1586_s14 }
  0x2c   : > { %p1760_p5 = por %p55_p4, %p54_p2  ;;  %s223_s30 = ssub.s32 %s1582_s13, %s2029_s17 }
  0x2d   : > { %p42_p6 = scmp.ge.s32.totalorder %s2031_s22, 2  ;;  %p1189_p8 = scmp.lt.s32.totalorder %s1590_s15, 4 }
  0x2e   : > { %s304_s21 = sand.u32 1, %s1570_s10   ;;  %s1150_s23 = sshll.u32 %s1586_s14, 4 }
  0x2f   : > { %s2033_s22 = smov (%p42_p6, %s2031_s22), 0  ;;  %s1116_s26 = sshll.u32 %s304_s21, 4 }
  0x30   : > { %2001 = sst [smem:[#allocation26_spill]] %s2033_s22  ;;  %s44_s18 = ssub.s32 %s1586_s14, %s2033_s22 }
  0x31   : > { %p45_p10 = scmp.eq.s32.totalorder %s44_s18, 0  ;;  %s224_s4 = sor.u32 %s223_s30, %s44_s18 }
  0x32   : > { %p225_p12 = scmp.eq.s32.totalorder %s224_s4, 0  ;;  %s2002_s0 = sld [smem:[#allocation27_spill]] }
  0x33   : > { %s1777_s13 = scalar_select %p45_p10, %s1570_s10, %s47_s6  }
  0x34   : > { %s2003_s8 = sadd.s32 1, %s1558_s29  ;;  %s308_s5 = scalar_lea.vmem [#allocation6], %s1116_s26 }
  0x35   : > { %s1782_s7 = scalar_select %p225_p12, %s1558_s29, %s2003_s8  }
  0x36   : > { %s316_s3 = sshll.u32 %s308_s5, 4  ;;  %p1177_p13 = pnand %p1189_p8, %p1760_p5  ;;  %s317_s3 = int_to_ptr.vmem [resolvable:$true] %s316_s3 }
  0x37   : > { %s326_s22 = sand.u32 1, %s1590_s15   ;;  %s332_s30 = scalar_lea.hbm %s1962_s1, %s1586_s14 }
  0x38   : > { %s313_s17 = scalar_lea.hbm %s2002_s0, %s1150_s23  ;;  %s305_s27 = scalar_lea.sflag [#allocation7], %s304_s21 }
  0x39   : > { %s314_s12 = sshll.u32 %s313_s17, 4  ;;  %s2004_s20 = smov 8   ;;  %s315_s12 = int_to_ptr.hbm [resolvable:$true] %s314_s12 }
  0x3a   : > { %s2005_s6 = smov 128   ;;  %s334_s8 = sshll.u32 %s332_s30, 4  ;;  %s335_s8 = int_to_ptr.hbm [resolvable:$true] %s334_s8 }
  0x3b   : > { %1179 = dma.hbm_to_vmem [thread:$0]  (!%p1177_p13), %s315_s12, 256, %s317_s3, %s305_s27, %s2005_s6, %s2005_s6, %s2004_s20  }
  0x3c   : > { %s329_s23 = scalar_lea.vmem [#allocation9], %s304_s21  ;;  %s327_s5 = scalar_lea.sflag [#allocation10], %s326_s22 }
  0x3d   : > { %s336_s17 = sshll.u32 %s329_s23, 4  ;;  %345 = sbr.rel (%p1734_p11) target bundleno = 1504 (0x5e0), region = 52  ;;  %s337_s17 = int_to_ptr.vmem [resolvable:$true] %s336_s17 }
  0x3e   : > { %1182 = dma.hbm_to_vmem [thread:$0]  (!%p1177_p13), %s335_s8, 16, %s337_s17, %s327_s5  }
  0x3f   : > { %s1799_s24 = sand.u32 (!%p1734_p11), 1, %s1566_s9  }
  0x40   : > { %s1120_s26 = sshll.u32 (!%p1734_p11), %s1799_s24, 4  ;;  %s348_s18 = scalar_lea.sflag (!%p1734_p11), [#allocation7], %s1799_s24 }
  0x41   : > { %s1803_s4 = scalar_lea.vmem (!%p1734_p11), [#allocation6], %s1120_s26 }
  0x42   : > { %1529 = dma.done.wait (%p1714_p3), %s348_s18, 256  }
  0x43   : > { %1531 = vsyncadd (%p1714_p3), %s348_s18, 4294967040  ;;  %s357_s3 = sand.u32 1, %s1704_s16   ;;  %s360_s25 = scalar_lea.vmem [#allocation9], %s1799_s24 }
  0x44   : > { %s358_s12 = scalar_lea.sflag [#allocation10], %s357_s3 }
  0x45   : > { %1533 = dma.done.wait (%p1714_p3), %s358_s12, 16  }
  0x46   : > { %1535 = vsyncadd (%p1714_p3), %s358_s12, 4294967280 }
  0x47   : > { %1537 = dma.done.wait (%p61_p1), [#allocation10], 512  }
  0x48   : > { %1539 = vsyncadd (%p61_p1), [#allocation10], 4294966784 }
  0x49   : > { %1541 = dma.done.wait (%p61_p1), [#allocation13], 512  }
  0x4a   : > { %1543 = vsyncadd (%p61_p1), [#allocation13], 4294966784  ;;  %s1980_s22 = sand.u32 1, %s1554_s28   ;;  %p1124_p3 = scmp.ne.s32.totalorder %s1574_s11, 0 }
  0x4b   : > { %s1826_s21 = sshll.u32 %s1980_s22, 3  ;;  %s2006_s6 = sld [smem:[#allocation28_spill]] (!%p1124_p3) }
  0x4c   : > { %s407_s19 = scalar_lea.vmem [#allocation14], %s1826_s21  ;;  %411 = sbr.rel (%p1124_p3) target bundleno = 602 (0x25a), region = 72 }
  0x4d   : > { %s2007_s17 = sld [smem:[#allocation30_spill]] (!%p1124_p3)  ;;  %s1597_s5 = smov (!%p1124_p3), 64  }
  0x4e   : > { %s1598_s26 = smov (!%p1124_p3), 96  }
  0x51   : > { %v412_v0 = vld [vmem:[%s1803_s4] sm:$0xff]  ;;  %vm416_vm0 = vcmask 261120   ;;  %v413_v2 = vld [vmem:[%s1803_s4 + $0x8] sm:$0xff]  ;;  %v1596_v4 = vmov 32.0  }
  0x52   : > { %v417_v1 = vsel %vm416_vm0, %v412_v0, 0.0  ;;  %v420_v3 = vsel %vm416_vm0, %v413_v2, 0.0  ;;  %1297 = vrcp.f32 %v1596_v4  ;;  %v481_v21 = vld [vmem:[#allocation11 + $0x18] sm:$0xff]  ;;  %v480_v22 = vld [vmem:[#allocation11 + $0x10] sm:$0xff]  ;;  %v479_v23 = vld [vmem:[#allocation11 + $0x8] sm:$0xff] }
  0x53   : > { %418 = vadd.xlane.f32.xlu0 %v417_v1  ;;  %504 = vmatpush.msra.mxu0 %v481_v21  ;;  %v478_v24 = vld [vmem:[#allocation11] sm:$0xff] }
  0x54   : > { %1151 = vmatpush.msra.mxu1 %v481_v21  ;;  %v1294_v39 = vld [vmem:[%s1963_s2] ss:$0 sm:$0xff] }
  0x55   : > { %505 = vmatpush.msra.mxu0 %v480_v22  ;;  %v1295_v43 = vld [vmem:[%s2006_s6] ss:$0 sm:$0xff] }
  0x56   : > { %1152 = vmatpush.msra.mxu1 %v480_v22  ;;  %v1296_v53 = vld [vmem:[%s2007_s17] ss:$0 sm:$0xff] }
  0x57   : > { %506 = vmatpush.msra.mxu0 %v479_v23 }
  0x58   : > { %v1298_v5 = vpop.eup %1297  ;;  %1153 = vmatpush.msra.mxu1 %v479_v23 }
  0x59   : > { %v424_v6 = vmul.f32 32.0, %v1298_v5  ;;  %vm428_vm1 = vweird.f32 %v1298_v5  ;;  %507 = vmatpush.msra.mxu0 %v478_v24 }
  0x5a   : > { %1154 = vmatpush.msra.mxu1 %v478_v24 }
  0x5b   : > { %421 = vadd.xlane.f32.xlu0 %v420_v3  ;;  %v425_v7 = vsub.f32 1.0, %v424_v6 }
  0x5d   : > { %v426_v8 = vmul.f32 %v1298_v5, %v425_v7 }
  0x5f   : > { %v427_v9 = vadd.f32 %v1298_v5, %v426_v8 }
  0x61   : > { %v429_v10 = vsel %vm428_vm1, %v1298_v5, %v427_v9 }
  0xc6   : > { %v419_v11 = vpop.xlane.xlu0 %418 }
  0xc7   : > { %v430_v12 = vmul.f32 %v429_v10, %v419_v11 }
  0xc9   : > { %v432_v13 = vsub.f32 %v412_v0, %v430_v12 }
  0xcb   : > { %v434_v14 = vmul.f32 %v432_v13, %v432_v13 }
  0xcd   : > { %v436_v15 = vsel %vm416_vm0, %v434_v14, 0.0 }
  0xce   : > { %437 = vadd.xlane.f32.xlu1 %v436_v15  ;;  %v422_v16 = vpop.xlane.xlu0 %421 }
  0xcf   : > { %v431_v17 = vmul.f32 %v429_v10, %v422_v16 }
  0xd1   : > { %v433_v18 = vsub.f32 %v413_v2, %v431_v17 }
  0xd3   : > { %v435_v19 = vmul.f32 %v433_v18, %v433_v18 }
  0xd5   : > { %v439_v20 = vsel %vm416_vm0, %v435_v19, 0.0 }
  0xd6   : > { %440 = vadd.xlane.f32.xlu1 %v439_v20 }
 0x141   : > { %v438_v25 = vpop.xlane.xlu1 %437 }
 0x142   : > { %v442_v26 = vmul.f32 %v438_v25, %v429_v10 }
 0x144   : > { %v444_v27 = vadd.f32 1e-12, %v442_v26 }
 0x146   : > { %1299 = vrsqrt.f32 %v444_v27  ;;  %vm452_vm3 = vweird.f32 %v444_v27 }
 0x149   : > { %v441_v28 = vpop.xlane.xlu1 %440 }
 0x14a   : > { %v443_v29 = vmul.f32 %v441_v28, %v429_v10 }
 0x14c   : > { %v1300_v30 = vpop.eup %1299  ;;  %v445_v31 = vadd.f32 1e-12, %v443_v29 }
 0x14d   : > { %v447_v32 = vmul.f32 %v1300_v30, %v444_v27  ;;  %vm453_vm2 = vweird.f32 %v1300_v30 }
 0x14e   : > { %1301 = vrsqrt.f32 %v445_v31  ;;  %vm454_vm4 = vmor %vm452_vm3, %vm453_vm2  ;;  %vm462_vm6 = vweird.f32 %v445_v31 }
 0x14f   : > { %v448_v33 = vmul.f32 %v1300_v30, %v447_v32 }
 0x151   : > { %v449_v34 = vmul.f32 0.5, %v448_v33 }
 0x153   : > { %v450_v35 = vsub.f32 1.5, %v449_v34 }
 0x154   : > { %v1302_v36 = vpop.eup %1301 }
 0x155   : > { %v451_v37 = vmul.f32 %v1300_v30, %v450_v35  ;;  %v457_v38 = vmul.f32 %v1302_v36, %v445_v31  ;;  %vm463_vm5 = vweird.f32 %v1302_v36 }
 0x156   : > { %vm464_vm7 = vmor %vm462_vm6, %vm463_vm5 }
 0x157   : > { %v455_v40 = vsel %vm454_vm4, %v1300_v30, %v451_v37  ;;  %v458_v41 = vmul.f32 %v1302_v36, %v457_v38 }
 0x158   : > { %v466_v42 = vmul.f32 %v455_v40, %v432_v13 }
 0x159   : > { %v459_v44 = vmul.f32 0.5, %v458_v41 }
 0x15a   : > { %v471_v45 = vmul.f32 %v1294_v39, %v466_v42 }
 0x15b   : > { %v460_v46 = vsub.f32 1.5, %v459_v44 }
 0x15c   : > { %v476_v47 = vadd.f32 %v1295_v43, %v471_v45 }
 0x15d   : > { %v461_v48 = vmul.f32 %v1302_v36, %v460_v46 }
 0x15e   : > { %1125 = vmatmul.msk.f32.vlgmr.msra.gmra.mxu0 %vm416_vm0, %v476_v47 }
 0x15f   : > { %v465_v49 = vsel %vm464_vm7, %v1302_v36, %v461_v48 }
 0x160   : > { %v467_v50 = vmul.f32 %v465_v49, %v433_v18 }
 0x162   : > { %v472_v51 = vmul.f32 %v1294_v39, %v467_v50 }
 0x164   : > { %v477_v52 = vadd.f32 %v1295_v43, %v472_v51 }
 0x166   : > { %1126 = vmatmul.msk.f32.vlgmr.msra.gmra.mxu1 %vm416_vm0, %v477_v52 }
 0x1db   : > { %v509_v54 = vpop.f32.mrf.mxu0 }
 0x1dc   : > { %v510_v55 = vadd.f32 %v1296_v53, %v509_v54 }
 0x1de   : > { %515 = vst.msk [vmem:[#allocation2] sm:$0xff] %vm416_vm0, %v510_v55  ;;  %527 = vrot.lane.b32.xlu0 %v510_v55, %s1597_s5  ;;  %519 = vrot.lane.b32.xlu2 %v510_v55, %s1598_s26 }
 0x1e3   : > { %v512_v56 = vpop.f32.mrf.mxu1 }
 0x1e4   : > { %v513_v57 = vadd.f32 %v1296_v53, %v512_v56 }
 0x1e6   : > { %516 = vst.msk [vmem:[#allocation2 + $0x8] sm:$0xff] %vm416_vm0, %v513_v57  ;;  %529 = vrot.lane.b32.xlu1 %v513_v57, %s1597_s5  ;;  %521 = vrot.lane.b32.xlu2 %v513_v57, %s1598_s26 }
 0x238   : > { %v520_v58 = vpop.permute.xlu2 %519 }
 0x239   : > { %525 = vst.msk [vmem:[#allocation3] sm:$0xff] %vm416_vm0, %v520_v58 }
 0x240   : > { %v522_v59 = vpop.permute.xlu2 %521 }
 0x241   : > { %526 = vst.msk [vmem:[#allocation3 + $0x8] sm:$0xff] %vm416_vm0, %v522_v59 }
 0x250   : > { %v528_v60 = vpop.permute.xlu0 %527 }
 0x251   : > { %533 = vst.msk [vmem:[#allocation4] sm:$0xff] %vm416_vm0, %v528_v60 }
 0x258   : > { %v530_v61 = vpop.permute.xlu1 %529 }
 0x259   : > { %534 = vst.msk [vmem:[#allocation4 + $0x8] sm:$0xff] %vm416_vm0, %v530_v61 }
 0x25a PF: > { %v731_v62 = vld [vmem:[#allocation3 + $0x8] sm:$0xff]  ;;  %v629_v63 = vld [vmem:[#allocation3] sm:$0xff]  ;;  %vm543_vm8 = vcmask 64512   ;;  %s1599_s18 = smov 112   ;;  %s1600_s3 = smov 120   ;;  %v676_v5 = vld [vmem:[#allocation4] sm:$0xff] }
 0x25b   : > { %738 = vrot.lane.b32.xlu2 %v731_v62, %s1599_s18  ;;  %635 = vrot.lane.b32.xlu1 %v629_v63, %s1600_s3  ;;  %s1127_s12 = sshll.u32 %s1574_s11, 3  ;;  %s1601_s30 = smov 104   ;;  %v1318_v10 = vld [vmem:[%s360_s25] ss:$0 sm:$0xff]  ;;  %vm578_vm9 = vcmask 130048  }
 0x25c   : > { %1128 = vmatpush.xpose.msk.msra.mxu0 %vm543_vm8, %v731_v62  ;;  %637 = vrot.lane.b32.xlu0 %v731_v62, %s1600_s3  ;;  %s538_s16 = scalar_lea.vmem [#allocation2], %s1127_s12  ;;  %s1602_s24 = smov 24  }
 0x25d   : > { %v539_v0 = vld [vmem:[%s538_s16] sm:$0xff]  ;;  %s1603_s25 = smov 8   ;;  %s1604_s27 = smov 16  }
 0x25e   : > { %s2008_s20 = sld [smem:[#allocation21_spill]]  ;;  %s536_s17 = scalar_lea.vmem %s1803_s4, %s1127_s12 [#allocation6] }
 0x25f   : > { %s982_s22 = sshll.u32 %s407_s19, 4  ;;  %s983_s22 = int_to_ptr.vmem [resolvable:$true] %s982_s22 }
 0x260   : > { %1129 = vmatpush.xpose.msk.msra.mxu0 %vm543_vm8, %v629_v63  ;;  %v677_v4 = vld [vmem:[#allocation4 + $0x8] sm:$0xff] }
 0x261   : > { %607 = vmatpush.msra.mxu1 %v677_v4  ;;  %v1303_v15 = vpack.i.bf16 %v676_v5, %v677_v4 }
 0x263   : > { %1130 = vmatmul.msk.f32.vlgmr.msra.gmra.mxu0 %vm543_vm8, %v539_v0  ;;  %839 = vrot.lane.b32.xlu2 %v731_v62, %s1601_s30 }
 0x264   : > { %631 = vrot.lane.b32.xlu1 %v539_v0, %s1600_s3  ;;  %608 = vmatpush.msra.mxu1 %v676_v5  ;;  %s1146_s6 = sshll.u32 %s2008_s20, 1 }
 0x265   : > { %s978_s8 = sadd.s32 %s1574_s11, %s1146_s6  ;;  %s2013_s11 = sand.u32 1, %s1554_s28  }
 0x266   : > { %s1147_s23 = sshll.u32 %s978_s8, 3  ;;  %s968_s4 = scalar_lea.sflag [#allocation8], %s2013_s11 }
 0x26b   : > { %837 = vrot.lane.b32.xlu2 %v629_v63, %s1601_s30 }
 0x26c   : > { %736 = vrot.lane.b32.xlu1 %v629_v63, %s1599_s18 }
 0x273   : > { %833 = vrot.lane.b32.xlu2 %v539_v0, %s1601_s30 }
 0x274   : > { %732 = vrot.lane.b32.xlu1 %v539_v0, %s1599_s18 }
 0x2b5   : > { %v739_v1 = vpop.permute.xlu2 %738 }
 0x2b6   : > { %1136 = vmatpush.xpose.msk.msrb.mxu1 %vm543_vm8, %v739_v1 }
 0x2bd   : > { %v840_v2 = vpop.permute.xlu2 %839 }
 0x2be   : > { %1140 = vmatpush.xpose.msk.msrb.mxu0 %vm543_vm8, %v840_v2 }
 0x2c5   : > { %v838_v3 = vpop.permute.xlu2 %837 }
 0x2c6   : > { %1141 = vmatpush.xpose.msk.msrb.mxu0 %vm543_vm8, %v838_v3 }
 0x2cd   : > { %v636_v6 = vpop.permute.xlu1 %635  ;;  %v834_v7 = vpop.permute.xlu2 %833 }
 0x2ce   : > { %v638_v8 = vpop.permute.xlu0 %637  ;;  %1142 = vmatmul.msk.f32.vlgmr.msrb.gmra.mxu0 %vm543_vm8, %v834_v7 }
 0x2cf   : > { %1132 = vmatpush.xpose.msk.msra.mxu2 %vm543_vm8, %v638_v8 }
 0x2d3   : > { %1133 = vmatpush.xpose.msk.msra.mxu2 %vm543_vm8, %v636_v6 }
 0x2d6   : > { %v632_v9 = vpop.permute.xlu1 %631 }
 0x2d7   : > { %1134 = vmatmul.msk.f32.vlgmr.msra.gmra.mxu2 %vm543_vm8, %v632_v9 }
 0x2de   : > { %v737_v16 = vpop.permute.xlu1 %736 }
 0x2df   : > { %1137 = vmatpush.xpose.msk.msrb.mxu1 %vm543_vm8, %v737_v16 }
 0x2e0   : > { %v570_v11 = vpop.f32.mrf.mxu0 }
 0x2e1   : > { %v573_v12 = vmul.f32 0.35355338, %v570_v11 }
 0x2e3   : > { %v577_v13 = vadd.f32 %v1318_v10, %v573_v12 }
 0x2e5   : > { %v579_v14 = vsel %vm578_vm9, %v577_v13, -inf }
 0x2e6   : > { %580 = vmax.xlane.f32.xlu0 %v579_v14  ;;  %v733_v29 = vpop.permute.xlu1 %732 }
 0x2fa   : > { %1304 = vrot.lane.b32.xlu0 %v1303_v15, %s1600_s3 }
 0x34b   : > { %v864_v17 = vpop.f32.mrf.mxu0 }
 0x34c   : > { %v867_v18 = vmul.f32 0.35355338, %v864_v17 }
 0x34e   : > { %v868_v19 = vadd.f32 %v1318_v10, %v867_v18 }
 0x350   : > { %v869_v20 = vsel %vm578_vm9, %v868_v19, -inf }
 0x351   : > { %870 = vmax.xlane.f32.xlu0 %v869_v20 }
 0x359   : > { %v581_v21 = vpop.xlane.xlu0 %580 }
 0x35a   : > { %v582_v22 = vsub.f32 %v577_v13, %v581_v21  ;;  %v662_v23 = vpop.f32.mrf.mxu2 }
 0x35b   : > { %v665_v24 = vmul.f32 0.35355338, %v662_v23 }
 0x35c   : > { %v583_v25 = vmul.f32 1.442695, %v582_v22 }
 0x35d   : > { %v666_v26 = vadd.f32 %v1318_v10, %v665_v24 }
 0x35e   : > { %1320 = vpow2.f32 %v583_v25 }
 0x35f   : > { %v667_v27 = vsel %vm578_vm9, %v666_v26, -inf }
 0x360   : > { %668 = vmax.xlane.f32.xlu1 %v667_v27 }
 0x364   : > { %v1321_v28 = vpop.eup %1320 }
 0x365   : > { %1131 = vmatmul.msk.f32.vlgmr.msra.gmra.mxu1 %vm578_vm9, %v1321_v28  ;;  %v585_v41 = vsel %vm578_vm9, %v1321_v28, 0.0 }
 0x36c   : > { %v1305_v30 = vpop.permute.xlu0 %1304 }
 0x36d   : > { %1138 = vmatmul.msk.f32.vlgmr.msrb.gmra.mxu1 %vm543_vm8, %v733_v29  ;;  %v1306_v31 = vunpack.i.l.bf16 %v1305_v30  ;;  %v1307_v32 = vunpack.i.h.bf16 %v1305_v30 }
 0x36f   : > { %703 = vmatpush.msra.mxu3 %v1306_v31 }
 0x371   : > { %704 = vmatpush.msra.mxu3 %v1307_v32 }
 0x379   : > { %1314 = vrot.lane.b32.xlu1 %v1303_v15, %s1601_s30  ;;  %s2010_s30 = sld [smem:[#allocation33_spill]] }
 0x3c4   : > { %v871_v33 = vpop.xlane.xlu0 %870 }
 0x3c5   : > { %v872_v34 = vsub.f32 %v868_v19, %v871_v33 }
 0x3c7   : > { %v873_v35 = vmul.f32 1.442695, %v872_v34 }
 0x3c9   : > { %1322 = vpow2.f32 %v873_v35 }
 0x3cf   : > { %v1323_v36 = vpop.eup %1322 }
 0x3d0   : > { %v875_v37 = vsel %vm578_vm9, %v1323_v36, 0.0 }
 0x3d1   : > { %876 = vadd.xlane.f32.xlu0 %v875_v37 }
 0x3d3   : > { %v669_v38 = vpop.xlane.xlu1 %668 }
 0x3d4   : > { %v670_v39 = vsub.f32 %v666_v26, %v669_v38 }
 0x3d6   : > { %v671_v40 = vmul.f32 1.442695, %v670_v39 }
 0x3d8   : > { %1324 = vpow2.f32 %v671_v40 }
 0x3d9   : > { %586 = vadd.xlane.f32.xlu0 %v585_v41 }
 0x3de   : > { %v1325_v42 = vpop.eup %1324 }
 0x3df   : > { %1135 = vmatmul.msk.f32.vlgmr.msra.gmra.mxu3 %vm578_vm9, %v1325_v42  ;;  %v673_v51 = vsel %vm578_vm9, %v1325_v42, 0.0 }
 0x3e2   : > { %v610_v43 = vpop.f32.mrf.mxu1 }
 0x3ea   : > { %v763_v44 = vpop.f32.mrf.mxu1 }
 0x3eb   : > { %v766_v45 = vmul.f32 0.35355338, %v763_v44  ;;  %v1315_v46 = vpop.permute.xlu1 %1314 }
 0x3ec   : > { %v1316_v47 = vunpack.i.l.bf16 %v1315_v46  ;;  %v1317_v48 = vunpack.i.h.bf16 %v1315_v46 }
 0x3ed   : > { %v767_v49 = vadd.f32 %v1318_v10, %v766_v45 }
 0x3ee   : > { %905 = vmatpush.msrb.mxu2 %v1316_v47 }
 0x3ef   : > { %v768_v50 = vsel %vm578_vm9, %v767_v49, -inf }
 0x3f0   : > { %906 = vmatpush.msrb.mxu2 %v1317_v48  ;;  %769 = vmax.xlane.f32.xlu2 %v768_v50  ;;  %v936_v48 = vld [vmem:[#allocation12 + $0x18] sm:$0xff]  ;;  %v934_v50 = vld [vmem:[#allocation12 + $0x8] sm:$0xff] }
 0x3f1   : > { %1143 = vmatmul.msk.f32.vlgmr.msrb.gmra.mxu2 %vm578_vm9, %v1323_v36  ;;  %957 = vmatpush.msra.mxu1 %v936_v48 }
 0x408   : > { %1309 = vrot.lane.b32.xlu2 %v1303_v15, %s1599_s18  ;;  %s2009_s18 = sld [smem:[#allocation32_spill]] }
 0x431   : > { %674 = vadd.xlane.f32.xlu2 %v673_v51  ;;  %v933_v51 = vld [vmem:[#allocation12] sm:$0xff] }
 0x444   : > { %v877_v52 = vpop.xlane.xlu0 %876 }
 0x445   : > { %vm916_vm14 = vweird.f32 %v877_v52  ;;  %v922_v13 = vand.u32 2147483648, %v877_v52  ;;  %v920_v15 = vand.u32 2147483647, %v877_v52 }
 0x447   : > { %v923_v16 = vor.u32 1.1754944e-38, %v922_v13  ;;  %vm921_vm1 = vcmp.eq.f32.partialorder %v920_v15, 8.507059e+37 }
 0x44c   : > { %v587_v53 = vpop.xlane.xlu0 %586 }
 0x44d   : > { %1326 = vrcp.f32 %v587_v53  ;;  %v624_v57 = vand.u32 2147483648, %v587_v53  ;;  %v622_v59 = vand.u32 2147483647, %v587_v53  ;;  %vm618_vm11 = vweird.f32 %v587_v53 }
 0x44f   : > { %v625_v61 = vor.u32 1.1754944e-38, %v624_v57  ;;  %vm623_vm13 = vcmp.eq.f32.partialorder %v622_v59, 8.507059e+37 }
 0x453   : > { %v1327_v54 = vpop.eup %1326 }
 0x454   : > { %v614_v55 = vmul.f32 %v1327_v54, %v587_v53  ;;  %vm619_vm10 = vweird.f32 %v1327_v54 }
 0x455   : > { %vm620_vm12 = vmor %vm618_vm11, %vm619_vm10  ;;  %vm728_vm10 = vcmask 130112   ;;  %vm829_vm11 = vcmask 195712  }
 0x456   : > { %v615_v56 = vsub.f32 1.0, %v614_v55  ;;  %v1319_v55 = vld [vmem:[%s2009_s18] ss:$0 sm:$0xff] }
 0x458   : > { %v616_v58 = vmul.f32 %v1327_v54, %v615_v56  ;;  %v537_v56 = vld [vmem:[%s536_s17] sm:$0xff] }
 0x45a   : > { %v617_v60 = vadd.f32 %v1327_v54, %v616_v58 }
 0x45c   : > { %v621_v62 = vsel %vm620_vm12, %v1327_v54, %v617_v60  ;;  %vm930_vm12 = vcmask 261312  }
 0x45d   : > { %v626_v63 = vsel %vm623_vm13, %v625_v61, %v621_v62  ;;  %vm941_vm13 = vcmask 261120  }
 0x45e   : > { %v627_v0 = vmul.f32 %v626_v63, %v610_v43 }
 0x460   : > { %628 = vst.msk [vmem:[#allocation5] sm:$0xff] %vm543_vm8, %v627_v0 }
 0x462   : > { %v706_v31 = vpop.f32.mrf.mxu3 }
 0x463   : > { %v770_v1 = vpop.xlane.xlu2 %769 }
 0x464   : > { %v771_v2 = vsub.f32 %v767_v49, %v770_v1  ;;  %v935_v49 = vld [vmem:[#allocation12 + $0x10] sm:$0xff] }
 0x465   : > { %958 = vmatpush.msra.mxu1 %v935_v49 }
 0x466   : > { %v772_v3 = vmul.f32 1.442695, %v771_v2 }
 0x467   : > { %959 = vmatpush.msra.mxu1 %v934_v50 }
 0x468   : > { %1328 = vpow2.f32 %v772_v3 }
 0x469   : > { %1330 = vrcp.f32 %v877_v52  ;;  %960 = vmatpush.msra.mxu1 %v933_v51 }
 0x46b   : > { %v1310_v4 = vpop.permute.xlu2 %1309 }
 0x46c   : > { %v1311_v5 = vunpack.i.l.bf16 %v1310_v4  ;;  %v1312_v7 = vunpack.i.h.bf16 %v1310_v4 }
 0x46e   : > { %v1329_v6 = vpop.eup %1328  ;;  %804 = vmatpush.msrb.mxu3 %v1311_v5 }
 0x46f   : > { %v774_v8 = vsel %vm578_vm9, %v1329_v6, 0.0  ;;  %v1331_v9 = vpop.eup %1330 }
 0x470   : > { %775 = vadd.xlane.f32.xlu1 %v774_v8  ;;  %805 = vmatpush.msrb.mxu3 %v1312_v7  ;;  %v912_v10 = vmul.f32 %v1331_v9, %v877_v52  ;;  %vm917_vm15 = vweird.f32 %v1331_v9 }
 0x471   : > { %1139 = vmatmul.msk.f32.vlgmr.msrb.gmra.mxu3 %vm578_vm9, %v1329_v6  ;;  %vm918_vm0 = vmor %vm916_vm14, %vm917_vm15 }
 0x472   : > { %v913_v11 = vsub.f32 1.0, %v912_v10 }
 0x474   : > { %v914_v12 = vmul.f32 %v1331_v9, %v913_v11  ;;  %v908_v18 = vpop.f32.mrf.mxu2 }
 0x476   : > { %v915_v14 = vadd.f32 %v1331_v9, %v914_v12 }
 0x478   : > { %v919_v17 = vsel %vm918_vm0, %v1331_v9, %v915_v14 }
 0x479   : > { %v924_v19 = vsel %vm921_vm1, %v923_v16, %v919_v17 }
 0x47a   : > { %v925_v20 = vmul.f32 %v924_v19, %v908_v18 }
 0x489   : > { %927 = vrot.lane.b32.xlu1 %v925_v20, %s1602_s24  ;;  %s2011_s24 = smov %s2010_s30 }
 0x4a4   : > { %v675_v21 = vpop.xlane.xlu2 %674 }
 0x4a5   : > { %1332 = vrcp.f32 %v675_v21  ;;  %v720_v25 = vand.u32 2147483648, %v675_v21  ;;  %v718_v27 = vand.u32 2147483647, %v675_v21  ;;  %vm714_vm3 = vweird.f32 %v675_v21 }
 0x4a7   : > { %v721_v29 = vor.u32 1.1754944e-38, %v720_v25  ;;  %vm719_vm5 = vcmp.eq.f32.partialorder %v718_v27, 8.507059e+37 }
 0x4ab   : > { %v1333_v22 = vpop.eup %1332 }
 0x4ac   : > { %v710_v23 = vmul.f32 %v1333_v22, %v675_v21  ;;  %vm715_vm2 = vweird.f32 %v1333_v22 }
 0x4ad   : > { %vm716_vm4 = vmor %vm714_vm3, %vm715_vm2 }
 0x4ae   : > { %v711_v24 = vsub.f32 1.0, %v710_v23 }
 0x4b0   : > { %v712_v26 = vmul.f32 %v1333_v22, %v711_v24 }
 0x4b2   : > { %v713_v28 = vadd.f32 %v1333_v22, %v712_v26 }
 0x4b4   : > { %v717_v30 = vsel %vm716_vm4, %v1333_v22, %v713_v28 }
 0x4b5   : > { %v722_v32 = vsel %vm719_vm5, %v721_v29, %v717_v30 }
 0x4b6   : > { %v723_v33 = vmul.f32 %v722_v32, %v706_v31 }
 0x4b8   : > { %725 = vrot.lane.b32.xlu0 %v723_v33, %s1603_s25 }
 0x4e3   : > { %v776_v34 = vpop.xlane.xlu1 %775 }
 0x4e4   : > { %1334 = vrcp.f32 %v776_v34  ;;  %v821_v38 = vand.u32 2147483648, %v776_v34  ;;  %v819_v40 = vand.u32 2147483647, %v776_v34  ;;  %vm815_vm7 = vweird.f32 %v776_v34 }
 0x4e6   : > { %v822_v42 = vor.u32 1.1754944e-38, %v821_v38  ;;  %vm820_vm9 = vcmp.eq.f32.partialorder %v819_v40, 8.507059e+37 }
 0x4ea   : > { %v1335_v35 = vpop.eup %1334 }
 0x4eb   : > { %v811_v36 = vmul.f32 %v1335_v35, %v776_v34  ;;  %vm816_vm6 = vweird.f32 %v1335_v35 }
 0x4ec   : > { %vm817_vm8 = vmor %vm815_vm7, %vm816_vm6 }
 0x4ed   : > { %v812_v37 = vsub.f32 1.0, %v811_v36 }
 0x4ef   : > { %v813_v39 = vmul.f32 %v1335_v35, %v812_v37 }
 0x4f1   : > { %v814_v41 = vadd.f32 %v1335_v35, %v813_v39 }
 0x4f3   : > { %v818_v43 = vsel %vm817_vm8, %v1335_v35, %v814_v41 }
 0x4f4   : > { %v807_v44 = vpop.f32.mrf.mxu3  ;;  %v823_v45 = vsel %vm820_vm9, %v822_v42, %v818_v43 }
 0x4f5   : > { %v824_v46 = vmul.f32 %v823_v45, %v807_v44 }
 0x4f7   : > { %826 = vrot.lane.b32.xlu2 %v824_v46, %s1604_s27  ;;  %s980_s27 = scalar_lea.hbm %s2010_s30, %s1147_s23  ;;  %s1476_s23 = scalar_lea.hbm %s2011_s24, 32 }
 0x4f8   : > { %s984_s0 = sshll.u32 %s980_s27, 4  ;;  %s985_s0 = int_to_ptr.hbm [resolvable:$true] %s984_s0 }
 0x4f9   : > { %s1470_s12 = sshra.s32 %s985_s0, 4  ;;  %s1471_s12 = int_to_ptr.hbm [resolvable:$true] %s1470_s12 }
 0x4fa   : > { %s1472_s20 = scalar_lea.hbm %s1471_s12, 8  ;;  %p1477_p2 = scmp.lt.s32.totalorder %s1471_s12, %s2011_s24 }
 0x4fb   : > { %v928_v53 = vpop.permute.xlu1 %927  ;;  %p1473_p1 = scmp.ne.s32.totalorder %s1471_s12, %s1472_s20  ;;  %p1478_p4 = scmp.lt.s32.totalorder %s1476_s23, %s1472_s20 }
 0x4fd   : > { %p1474_p11 = pnand %p1473_p1, %p1721_p7  ;;  %p1479_p5 = por %p1478_p4, %p1477_p2 }
 0x4ff   : > { %p1475_p0 = pneg %p1474_p11 }
 0x501   : > { %p1480_p6 = pnand %p1479_p5, %p1475_p0 }
 0x52a   : > { %v726_v47 = vpop.permute.xlu0 %725 }
 0x52b   : > { %729 = vst.msk [vmem:[#allocation5] sm:$0xff] %vm728_vm10, %v726_v47 }
 0x551   : > { %v827_v52 = vpop.permute.xlu2 %826 }
 0x552   : > { %830 = vst.msk [vmem:[#allocation5] sm:$0xff] %vm829_vm11, %v827_v52 }
 0x553   : > { %931 = vst.msk [vmem:[#allocation5] sm:$0xff] %vm930_vm12, %v928_v53 }
 0x55a   : > { %v932_v54 = vld [vmem:[#allocation5] sm:$0xff] }
 0x55b   : > { %1144 = vmatmul.msk.f32.vlgmr.msra.gmra.mxu1 %vm941_vm13, %v932_v54 }
 0x5d8   : > { %v962_v57 = vpop.f32.mrf.mxu1 }
 0x5d9   : > { %v963_v58 = vadd.f32 %v1319_v55, %v962_v57 }
 0x5db   : > { %v965_v59 = vadd.f32 %v963_v58, %v537_v56 }
 0x5dd   : > { %966 = vst.msk [vmem:[%s407_s19] sm:$0xff] %vm941_vm13, %v965_v59 }
 0x5de   : > { %1483 = shalt.err (!%p1480_p6)
}
 0x5df   : > { %1167 = dma.vmem_to_hbm [thread:$0]  (%p1721_p7), %s983_s22, 128, %s985_s0, %s968_s4  }
 0x5e0 PF: > { %s2014_s21 = sld [smem:[#allocation20_spill]]  ;;  %p1192_p8 = scmp.ge.s32.totalorder %s1590_s15, 2 }
 0x5e2   : > { %p1184_p10 = pnand %p1192_p8, %p1726_p9 }
 0x5e4   : > { %p1185_p12 = pneg %p1184_p10 }
 0x5e6   : > { %s996_s26 = sand.u32 1, %s2014_s21  }
 0x5e7   : > { %s997_s18 = scalar_lea.sflag [#allocation8], %s996_s26 }
 0x5e8   : > { %1545 = dma.done.wait (%p1185_p12), %s997_s18, 128  }
 0x5e9   : > { %1547 = vsyncadd (%p1185_p12), %s997_s18, 4294967168  ;;  %s28_s15 = sadd.s32 1, %s1590_s15   ;;  %s2016_s11 = sld [smem:[#allocation22_spill]] }
 0x5ea   : > { %p25_p13 = scmp.ge.s32.totalorder %s28_s15, 6   ;;  %s2017_s0 = sld [smem:[#allocation25_spill]] }
 0x5eb   : > { %s2018_s22 = sld [smem:[#allocation26_spill]]  ;;  %s2019_s27 = smov %s1554_s28 }
 0x5ec   : > { %s2020_s28 = smov %s1558_s29  ;;  %s2021_s29 = smov %s1782_s7 }
 0x5ed   : > { %s2022_s30 = smov %s1566_s9  ;;  %s2023_s9 = smov %s1570_s10 }
 0x5ee   : > { %s2024_s10 = smov %s1777_s13  ;;  %s2025_s12 = smov %s1586_s14 }
 0x5ef   :  { %27 = sbr.rel (!%p25_p13) target bundleno = 20 (0x14), region = 124 }
 0x5f0   : > { %s2026_s13 = smov %s2017_s0 }
 0x5f1   : > { %s2027_s14 = smov %s2018_s22 }
 0x5f4   :  { %1003 = vsyncpa [#allocation7], 1 }
 0x5f5   :  { %1005 = vsyncpa [#allocation7 + $0x1], 1 }
 0x5f6   :  { %1006 = vsyncpa [#allocation10], 1 }
 0x5f7   :  { %1008 = vsyncpa [#allocation10 + $0x1], 1 }
 0x5f8   :  { %1009 = vsyncpa [#allocation13], 1 }
 0x5f9   :  { %1010 = vsyncpa [#allocation8], 1 }
 0x5fa   :  { %1012 = vsyncpa [#allocation8 + $0x1], 1 }

// kernel: tpu_custom_call.1
= control target key start
LH: loop header
LB: loop body
LE: loop exit
PB: predicated region body
PF: predicated region fallthrough
CT: control target
= control target key end

     0   :  { %s1961_s0 = inlined_call_operand.hbm [shape: f32[2,16,32], index: 0, kind: input, shape index: {}]   ;;  %s1962_s1 = inlined_call_operand.hbm [shape: f32[2,1,16], index: 1, kind: input, shape index: {}]   ;;  %s1963_s2 = inlined_call_operand.vmem [shape: f32[1,32], index: 2, kind: input, shape index: {}]   ;;  %s1964_s3 = inlined_call_operand.vmem [shape: f32[1,32], index: 3, kind: input, shape index: {}]   ;;  %s1965_s4 = inlined_call_operand.hbm [shape: f32[32,96], index: 4, kind: input, shape index: {}]   ;;  %s1966_s5 = inlined_call_operand.vmem [shape: f32[1,96], index: 5, kind: input, shape index: {}]   ;;  %s1967_s6 = inlined_call_operand.hbm [shape: f32[32,32], index: 6, kind: input, shape index: {}]   ;;  %s1968_s7 = inlined_call_operand.vmem [shape: f32[1,32], index: 7, kind: input, shape index: {}]   ;;  %s1969_s8 = inlined_call_operand.hbm [shape: f32[2,16,32], index: 8, kind: output, shape index: {}]  }
   0x1   :  { %1981 = sst [smem:[#allocation27_spill]] %s1961_s0 }
   0x2   :  { %1982 = sst [smem:[#allocation28_spill]] %s1964_s3 }
   0x3   :  { %1983 = sst [smem:[#allocation29_spill]] %s1965_s4 }
   0x4   :  { %1984 = sst [smem:[#allocation30_spill]] %s1966_s5 }
   0x5   :  { %1985 = sst [smem:[#allocation31_spill]] %s1967_s6 }
   0x6   :  { %1986 = sst [smem:[#allocation32_spill]] %s1968_s7 }
   0x7   :  { %1987 = sst [smem:[#allocation33_spill]] %s1969_s8 }
   0x8   :  { %13 = vsyncpa [#allocation7], 0 }
   0x9   :  { %15 = vsyncpa [#allocation7 + $0x1], 0 }
   0xa   :  { %16 = vsyncpa [#allocation10], 0 }
   0xb   :  { %18 = vsyncpa [#allocation10 + $0x1], 0 }
   0xc   :  { %19 = vsyncpa [#allocation13], 0 }
   0xd   :  { %20 = vsyncpa [#allocation8], 0 }
   0xe   :  { %22 = vsyncpa [#allocation8 + $0x1], 0  ;;  %s1650_s27 = smov 0   ;;  %s1652_s28 = smov 0  }
   0xf   :  { %s1654_s29 = smov 0   ;;  %s1656_s30 = smov 0  }
  0x10   :  { %s1658_s9 = smov 0   ;;  %s1660_s10 = smov 0  }
  0x11   :  { %s1662_s11 = smov 0   ;;  %s1664_s12 = smov 0  }
  0x12   :  { %s1666_s13 = smov 0   ;;  %s1668_s14 = smov 0  }
  0x13   :  { %s1670_s15 = smov 0  }
  0x14 LB: > { %1988 = sst [smem:[#allocation20_spill]] %s1550_s27  ;;  %s1704_s16 = sadd.s32 4294967295, %s1590_s15   ;;  %s1590_s15 = sphi %s1670_s15, %s28_s15   ;;  %s1586_s14 = sphi %s1668_s14, %s2027_s14   ;;  %s1582_s13 = sphi %s1666_s13, %s2026_s13   ;;  %s1578_s12 = sphi %s1664_s12, %s2025_s12   ;;  %s1574_s11 = sphi %s1662_s11, %s2016_s11   ;;  %s1570_s10 = sphi %s1660_s10, %s2024_s10   ;;  %s1566_s9 = sphi %s1658_s9, %s2023_s9   ;;  %s1562_s30 = sphi %s1656_s30, %s2022_s30   ;;  %s1558_s29 = sphi %s1654_s29, %s2021_s29   ;;  %s1554_s28 = sphi %s1652_s28, %s2020_s28   ;;  %s1550_s27 = sphi %s1650_s27, %s2019_s27  }
  0x15   : > { %1989 = sst [smem:[#allocation21_spill]] %s1578_s12  ;;  %s1111_s17 = sadd.s32 4294967294, %s1590_s15  }
  0x16   : > { %1990 = sst [smem:[#allocation22_spill]] %s1582_s13  ;;  %p60_p0 = scmp.ne.s32.totalorder %s1566_s9, %s1562_s30 }
  0x17   : > { %p61_p1 = scmp.eq.s32.totalorder %s1704_s16, 0  ;;  %p237_p2 = scmp.ne.s32.totalorder %s1558_s29, %s1554_s28 }
  0x18   : > { %p238_p4 = scmp.eq.s32.totalorder %s1704_s16, 3  ;;  %p243_p5 = scmp.ne.s32.totalorder %s1554_s28, %s1550_s27 }
  0x19   : > { %p1714_p3 = por %p61_p1, %p60_p0  ;;  %p244_p6 = scmp.eq.s32.totalorder %s1111_s17, 3 }
  0x1a   : > { %p1721_p7 = por %p238_p4, %p237_p2  ;;  %p1112_p8 = scmp.ge.s32.totalorder %s1590_s15, 1 }
  0x1b   : > { %p1726_p9 = por %p244_p6, %p243_p5  ;;  %p251_p10 = scmp.lt.s32.totalorder %s1590_s15, 5 }
  0x1c   : > { %s1992_s20 = scalar_select %p1721_p7, 1, 0 }
  0x1d   : > { %s1994_s21 = scalar_select %p1726_p9, 1, 0 }
  0x1e   : > { %1993 = sst [smem:[#allocation23_spill]] %s1992_s20  ;;  %p1734_p11 = pnand %p1112_p8, %p251_p10 }
  0x1f   : > { %1995 = sst [smem:[#allocation24_spill]] %s1994_s21  ;;  %s1592_s26 = smov [#allocation11]  }
  0x20   : > { %s1996_s4 = sld [smem:[#allocation29_spill]]  ;;  %p1169_p12 = pneg %p1734_p11 }
  0x21   : > { %s270_s30 = sshll.u32 %s1592_s26, 4  ;;  %s1998_s6 = sld [smem:[#allocation31_spill]]  ;;  %s271_s30 = int_to_ptr.vmem [resolvable:$true] %s270_s30 }
  0x22   : > { %p1170_p13 = pnand %p1169_p12, %p61_p1  ;;  %s1971_s18 = smov 128  }
  0x23   : > { %s1595_s26 = smov [#allocation12]   ;;  %s37_s17 = sadd.s32 1, %s1582_s13 }
  0x24   : > { %s287_s21 = sshll.u32 %s1595_s26, 4  ;;  %s40_s22 = sadd.s32 1, %s1586_s14  ;;  %s288_s21 = int_to_ptr.vmem [resolvable:$true] %s287_s21 }
  0x25   : > { %p38_p0 = scmp.ge.s32.totalorder %s37_s17, 2  ;;  %p54_p2 = scmp.ne.s32.totalorder %s1570_s10, %s1566_s9 }
  0x26   : > { %s268_s24 = sshll.u32 %s1996_s4, 4  ;;  %s1972_s4 = smov 8   ;;  %s269_s24 = int_to_ptr.hbm [resolvable:$true] %s268_s24 }
  0x27   : > { %s285_s23 = sshll.u32 %s1998_s6, 4  ;;  %s47_s6 = sadd.s32 1, %s1570_s10  ;;  %s286_s23 = int_to_ptr.hbm [resolvable:$true] %s285_s23 }
  0x28   : > { %1172 = dma.hbm_to_vmem [thread:$0]  (!%p1170_p13), %s269_s24, 512, %s271_s30, [#allocation10], %s1971_s18, %s1971_s18, %s1972_s4  }
  0x29   : > { %1175 = dma.hbm_to_vmem [thread:$0]  (!%p1170_p13), %s286_s23, 512, %s288_s21, [#allocation13], %s1971_s18, %s1971_s18, %s1972_s4  }
  0x2a   : > { %p55_p4 = scmp.eq.s32.totalorder %s1590_s15, 0  ;;  %s2029_s17 = smov (%p38_p0, %s37_s17), 0 }
  0x2b   : > { %1999 = sst [smem:[#allocation25_spill]] %s2029_s17  ;;  %s2031_s22 = smov (!%p38_p0, %s40_s22), %s1586_s14 }
  0x2c   : > { %p1760_p5 = por %p55_p4, %p54_p2  ;;  %s223_s30 = ssub.s32 %s1582_s13, %s2029_s17 }
  0x2d   : > { %p42_p6 = scmp.ge.s32.totalorder %s2031_s22, 2  ;;  %p1189_p8 = scmp.lt.s32.totalorder %s1590_s15, 4 }
  0x2e   : > { %s304_s21 = sand.u32 1, %s1570_s10   ;;  %s1150_s23 = sshll.u32 %s1586_s14, 4 }
  0x2f   : > { %s2033_s22 = smov (%p42_p6, %s2031_s22), 0  ;;  %s1116_s26 = sshll.u32 %s304_s21, 4 }
  0x30   : > { %2001 = sst [smem:[#allocation26_spill]] %s2033_s22  ;;  %s44_s18 = ssub.s32 %s1586_s14, %s2033_s22 }
  0x31   : > { %p45_p10 = scmp.eq.s32.totalorder %s44_s18, 0  ;;  %s224_s4 = sor.u32 %s223_s30, %s44_s18 }
  0x32   : > { %p225_p12 = scmp.eq.s32.totalorder %s224_s4, 0  ;;  %s2002_s0 = sld [smem:[#allocation27_spill]] }
  0x33   : > { %s1777_s13 = scalar_select %p45_p10, %s1570_s10, %s47_s6  }
  0x34   : > { %s2003_s8 = sadd.s32 1, %s1558_s29  ;;  %s308_s5 = scalar_lea.vmem [#allocation6], %s1116_s26 }
  0x35   : > { %s1782_s7 = scalar_select %p225_p12, %s1558_s29, %s2003_s8  }
  0x36   : > { %s316_s3 = sshll.u32 %s308_s5, 4  ;;  %p1177_p13 = pnand %p1189_p8, %p1760_p5  ;;  %s317_s3 = int_to_ptr.vmem [resolvable:$true] %s316_s3 }
  0x37   : > { %s326_s22 = sand.u32 1, %s1590_s15   ;;  %s332_s30 = scalar_lea.hbm %s1962_s1, %s1586_s14 }
  0x38   : > { %s313_s17 = scalar_lea.hbm %s2002_s0, %s1150_s23  ;;  %s305_s27 = scalar_lea.sflag [#allocation7], %s304_s21 }
  0x39   : > { %s314_s12 = sshll.u32 %s313_s17, 4  ;;  %s2004_s20 = smov 8   ;;  %s315_s12 = int_to_ptr.hbm [resolvable:$true] %s314_s12 }
  0x3a   : > { %s2005_s6 = smov 128   ;;  %s334_s8 = sshll.u32 %s332_s30, 4  ;;  %s335_s8 = int_to_ptr.hbm [resolvable:$true] %s334_s8 }
  0x3b   : > { %1179 = dma.hbm_to_vmem [thread:$0]  (!%p1177_p13), %s315_s12, 256, %s317_s3, %s305_s27, %s2005_s6, %s2005_s6, %s2004_s20  }
  0x3c   : > { %s329_s23 = scalar_lea.vmem [#allocation9], %s304_s21  ;;  %s327_s5 = scalar_lea.sflag [#allocation10], %s326_s22 }
  0x3d   : > { %s336_s17 = sshll.u32 %s329_s23, 4  ;;  %345 = sbr.rel (%p1734_p11) target bundleno = 1504 (0x5e0), region = 52  ;;  %s337_s17 = int_to_ptr.vmem [resolvable:$true] %s336_s17 }
  0x3e   : > { %1182 = dma.hbm_to_vmem [thread:$0]  (!%p1177_p13), %s335_s8, 16, %s337_s17, %s327_s5  }
  0x3f   : > { %s1799_s24 = sand.u32 (!%p1734_p11), 1, %s1566_s9  }
  0x40   : > { %s1120_s26 = sshll.u32 (!%p1734_p11), %s1799_s24, 4  ;;  %s348_s18 = scalar_lea.sflag (!%p1734_p11), [#allocation7], %s1799_s24 }
  0x41   : > { %s1803_s4 = scalar_lea.vmem (!%p1734_p11), [#allocation6], %s1120_s26 }
  0x42   : > { %1529 = dma.done.wait (%p1714_p3), %s348_s18, 256  }
  0x43   : > { %1531 = vsyncadd (%p1714_p3), %s348_s18, 4294967040  ;;  %s357_s3 = sand.u32 1, %s1704_s16   ;;  %s360_s25 = scalar_lea.vmem [#allocation9], %s1799_s24 }
  0x44   : > { %s358_s12 = scalar_lea.sflag [#allocation10], %s357_s3 }
  0x45   : > { %1533 = dma.done.wait (%p1714_p3), %s358_s12, 16  }
  0x46   : > { %1535 = vsyncadd (%p1714_p3), %s358_s12, 4294967280 }
  0x47   : > { %1537 = dma.done.wait (%p61_p1), [#allocation10], 512  }
  0x48   : > { %1539 = vsyncadd (%p61_p1), [#allocation10], 4294966784 }
  0x49   : > { %1541 = dma.done.wait (%p61_p1), [#allocation13], 512  }
  0x4a   : > { %1543 = vsyncadd (%p61_p1), [#allocation13], 4294966784  ;;  %s1980_s22 = sand.u32 1, %s1554_s28   ;;  %p1124_p3 = scmp.ne.s32.totalorder %s1574_s11, 0 }
  0x4b   : > { %s1826_s21 = sshll.u32 %s1980_s22, 3  ;;  %s2006_s6 = sld [smem:[#allocation28_spill]] (!%p1124_p3) }
  0x4c   : > { %s407_s19 = scalar_lea.vmem [#allocation14], %s1826_s21  ;;  %411 = sbr.rel (%p1124_p3) target bundleno = 602 (0x25a), region = 72 }
  0x4d   : > { %s2007_s17 = sld [smem:[#allocation30_spill]] (!%p1124_p3)  ;;  %s1597_s5 = smov (!%p1124_p3), 64  }
  0x4e   : > { %s1598_s26 = smov (!%p1124_p3), 96  }
  0x51   : > { %v412_v0 = vld [vmem:[%s1803_s4] sm:$0xff]  ;;  %vm416_vm0 = vcmask 261120   ;;  %v413_v2 = vld [vmem:[%s1803_s4 + $0x8] sm:$0xff]  ;;  %v1596_v4 = vmov 32.0  }
  0x52   : > { %v417_v1 = vsel %vm416_vm0, %v412_v0, 0.0  ;;  %v420_v3 = vsel %vm416_vm0, %v413_v2, 0.0  ;;  %1297 = vrcp.f32 %v1596_v4  ;;  %v481_v21 = vld [vmem:[#allocation11 + $0x18] sm:$0xff]  ;;  %v480_v22 = vld [vmem:[#allocation11 + $0x10] sm:$0xff]  ;;  %v479_v23 = vld [vmem:[#allocation11 + $0x8] sm:$0xff] }
  0x53   : > { %418 = vadd.xlane.f32.xlu0 %v417_v1  ;;  %504 = vmatpush.msra.mxu0 %v481_v21  ;;  %v478_v24 = vld [vmem:[#allocation11] sm:$0xff] }
  0x54   : > { %1151 = vmatpush.msra.mxu1 %v481_v21  ;;  %v1294_v39 = vld [vmem:[%s1963_s2] ss:$0 sm:$0xff] }
  0x55   : > { %505 = vmatpush.msra.mxu0 %v480_v22  ;;  %v1295_v43 = vld [vmem:[%s2006_s6] ss:$0 sm:$0xff] }
  0x56   : > { %1152 = vmatpush.msra.mxu1 %v480_v22  ;;  %v1296_v53 = vld [vmem:[%s2007_s17] ss:$0 sm:$0xff] }
  0x57   : > { %506 = vmatpush.msra.mxu0 %v479_v23 }
  0x58   : > { %v1298_v5 = vpop.eup %1297  ;;  %1153 = vmatpush.msra.mxu1 %v479_v23 }
  0x59   : > { %v424_v6 = vmul.f32 32.0, %v1298_v5  ;;  %vm428_vm1 = vweird.f32 %v1298_v5  ;;  %507 = vmatpush.msra.mxu0 %v478_v24 }
  0x5a   : > { %1154 = vmatpush.msra.mxu1 %v478_v24 }
  0x5b   : > { %421 = vadd.xlane.f32.xlu0 %v420_v3  ;;  %v425_v7 = vsub.f32 1.0, %v424_v6 }
  0x5d   : > { %v426_v8 = vmul.f32 %v1298_v5, %v425_v7 }
  0x5f   : > { %v427_v9 = vadd.f32 %v1298_v5, %v426_v8 }
  0x61   : > { %v429_v10 = vsel %vm428_vm1, %v1298_v5, %v427_v9 }
  0xc6   : > { %v419_v11 = vpop.xlane.xlu0 %418 }
  0xc7   : > { %v430_v12 = vmul.f32 %v429_v10, %v419_v11 }
  0xc9   : > { %v432_v13 = vsub.f32 %v412_v0, %v430_v12 }
  0xcb   : > { %v434_v14 = vmul.f32 %v432_v13, %v432_v13 }
  0xcd   : > { %v436_v15 = vsel %vm416_vm0, %v434_v14, 0.0 }
  0xce   : > { %437 = vadd.xlane.f32.xlu1 %v436_v15  ;;  %v422_v16 = vpop.xlane.xlu0 %421 }
  0xcf   : > { %v431_v17 = vmul.f32 %v429_v10, %v422_v16 }
  0xd1   : > { %v433_v18 = vsub.f32 %v413_v2, %v431_v17 }
  0xd3   : > { %v435_v19 = vmul.f32 %v433_v18, %v433_v18 }
  0xd5   : > { %v439_v20 = vsel %vm416_vm0, %v435_v19, 0.0 }
  0xd6   : > { %440 = vadd.xlane.f32.xlu1 %v439_v20 }
 0x141   : > { %v438_v25 = vpop.xlane.xlu1 %437 }
 0x142   : > { %v442_v26 = vmul.f32 %v438_v25, %v429_v10 }
 0x144   : > { %v444_v27 = vadd.f32 1e-12, %v442_v26 }
 0x146   : > { %1299 = vrsqrt.f32 %v444_v27  ;;  %vm452_vm3 = vweird.f32 %v444_v27 }
 0x149   : > { %v441_v28 = vpop.xlane.xlu1 %440 }
 0x14a   : > { %v443_v29 = vmul.f32 %v441_v28, %v429_v10 }
 0x14c   : > { %v1300_v30 = vpop.eup %1299  ;;  %v445_v31 = vadd.f32 1e-12, %v443_v29 }
 0x14d   : > { %v447_v32 = vmul.f32 %v1300_v30, %v444_v27  ;;  %vm453_vm2 = vweird.f32 %v1300_v30 }
 0x14e   : > { %1301 = vrsqrt.f32 %v445_v31  ;;  %vm454_vm4 = vmor %vm452_vm3, %vm453_vm2  ;;  %vm462_vm6 = vweird.f32 %v445_v31 }
 0x14f   : > { %v448_v33 = vmul.f32 %v1300_v30, %v447_v32 }
 0x151   : > { %v449_v34 = vmul.f32 0.5, %v448_v33 }
 0x153   : > { %v450_v35 = vsub.f32 1.5, %v449_v34 }
 0x154   : > { %v1302_v36 = vpop.eup %1301 }
 0x155   : > { %v451_v37 = vmul.f32 %v1300_v30, %v450_v35  ;;  %v457_v38 = vmul.f32 %v1302_v36, %v445_v31  ;;  %vm463_vm5 = vweird.f32 %v1302_v36 }
 0x156   : > { %vm464_vm7 = vmor %vm462_vm6, %vm463_vm5 }
 0x157   : > { %v455_v40 = vsel %vm454_vm4, %v1300_v30, %v451_v37  ;;  %v458_v41 = vmul.f32 %v1302_v36, %v457_v38 }
 0x158   : > { %v466_v42 = vmul.f32 %v455_v40, %v432_v13 }
 0x159   : > { %v459_v44 = vmul.f32 0.5, %v458_v41 }
 0x15a   : > { %v471_v45 = vmul.f32 %v1294_v39, %v466_v42 }
 0x15b   : > { %v460_v46 = vsub.f32 1.5, %v459_v44 }
 0x15c   : > { %v476_v47 = vadd.f32 %v1295_v43, %v471_v45 }
 0x15d   : > { %v461_v48 = vmul.f32 %v1302_v36, %v460_v46 }
 0x15e   : > { %1125 = vmatmul.msk.f32.vlgmr.msra.gmra.mxu0 %vm416_vm0, %v476_v47 }
 0x15f   : > { %v465_v49 = vsel %vm464_vm7, %v1302_v36, %v461_v48 }
 0x160   : > { %v467_v50 = vmul.f32 %v465_v49, %v433_v18 }
 0x162   : > { %v472_v51 = vmul.f32 %v1294_v39, %v467_v50 }
 0x164   : > { %v477_v52 = vadd.f32 %v1295_v43, %v472_v51 }
 0x166   : > { %1126 = vmatmul.msk.f32.vlgmr.msra.gmra.mxu1 %vm416_vm0, %v477_v52 }
 0x1db   : > { %v509_v54 = vpop.f32.mrf.mxu0 }
 0x1dc   : > { %v510_v55 = vadd.f32 %v1296_v53, %v509_v54 }
 0x1de   : > { %515 = vst.msk [vmem:[#allocation2] sm:$0xff] %vm416_vm0, %v510_v55  ;;  %527 = vrot.lane.b32.xlu0 %v510_v55, %s1597_s5  ;;  %519 = vrot.lane.b32.xlu2 %v510_v55, %s1598_s26 }
 0x1e3   : > { %v512_v56 = vpop.f32.mrf.mxu1 }
 0x1e4   : > { %v513_v57 = vadd.f32 %v1296_v53, %v512_v56 }
 0x1e6   : > { %516 = vst.msk [vmem:[#allocation2 + $0x8] sm:$0xff] %vm416_vm0, %v513_v57  ;;  %529 = vrot.lane.b32.xlu1 %v513_v57, %s1597_s5  ;;  %521 = vrot.lane.b32.xlu2 %v513_v57, %s1598_s26 }
 0x238   : > { %v520_v58 = vpop.permute.xlu2 %519 }
 0x239   : > { %525 = vst.msk [vmem:[#allocation3] sm:$0xff] %vm416_vm0, %v520_v58 }
 0x240   : > { %v522_v59 = vpop.permute.xlu2 %521 }
 0x241   : > { %526 = vst.msk [vmem:[#allocation3 + $0x8] sm:$0xff] %vm416_vm0, %v522_v59 }
 0x250   : > { %v528_v60 = vpop.permute.xlu0 %527 }
 0x251   : > { %533 = vst.msk [vmem:[#allocation4] sm:$0xff] %vm416_vm0, %v528_v60 }
 0x258   : > { %v530_v61 = vpop.permute.xlu1 %529 }
 0x259   : > { %534 = vst.msk [vmem:[#allocation4 + $0x8] sm:$0xff] %vm416_vm0, %v530_v61 }
 0x25a PF: > { %v731_v62 = vld [vmem:[#allocation3 + $0x8] sm:$0xff]  ;;  %v629_v63 = vld [vmem:[#allocation3] sm:$0xff]  ;;  %vm543_vm8 = vcmask 64512   ;;  %s1599_s18 = smov 112   ;;  %s1600_s3 = smov 120   ;;  %v676_v5 = vld [vmem:[#allocation4] sm:$0xff] }
 0x25b   : > { %738 = vrot.lane.b32.xlu2 %v731_v62, %s1599_s18  ;;  %635 = vrot.lane.b32.xlu1 %v629_v63, %s1600_s3  ;;  %s1127_s12 = sshll.u32 %s1574_s11, 3  ;;  %s1601_s30 = smov 104   ;;  %v1318_v10 = vld [vmem:[%s360_s25] ss:$0 sm:$0xff]  ;;  %vm578_vm9 = vcmask 130048  }
 0x25c   : > { %1128 = vmatpush.xpose.msk.msra.mxu0 %vm543_vm8, %v731_v62  ;;  %637 = vrot.lane.b32.xlu0 %v731_v62, %s1600_s3  ;;  %s538_s16 = scalar_lea.vmem [#allocation2], %s1127_s12  ;;  %s1602_s24 = smov 24  }
 0x25d   : > { %v539_v0 = vld [vmem:[%s538_s16] sm:$0xff]  ;;  %s1603_s25 = smov 8   ;;  %s1604_s27 = smov 16  }
 0x25e   : > { %s2008_s20 = sld [smem:[#allocation21_spill]]  ;;  %s536_s17 = scalar_lea.vmem %s1803_s4, %s1127_s12 [#allocation6] }
 0x25f   : > { %s982_s22 = sshll.u32 %s407_s19, 4  ;;  %s983_s22 = int_to_ptr.vmem [resolvable:$true] %s982_s22 }
 0x260   : > { %1129 = vmatpush.xpose.msk.msra.mxu0 %vm543_vm8, %v629_v63  ;;  %v677_v4 = vld [vmem:[#allocation4 + $0x8] sm:$0xff] }
 0x261   : > { %607 = vmatpush.msra.mxu1 %v677_v4  ;;  %v1303_v15 = vpack.i.bf16 %v676_v5, %v677_v4 }
 0x263   : > { %1130 = vmatmul.msk.f32.vlgmr.msra.gmra.mxu0 %vm543_vm8, %v539_v0  ;;  %839 = vrot.lane.b32.xlu2 %v731_v62, %s1601_s30 }
 0x264   : > { %631 = vrot.lane.b32.xlu1 %v539_v0, %s1600_s3  ;;  %608 = vmatpush.msra.mxu1 %v676_v5  ;;  %s1146_s6 = sshll.u32 %s2008_s20, 1 }
 0x265   : > { %s978_s8 = sadd.s32 %s1574_s11, %s1146_s6  ;;  %s2013_s11 = sand.u32 1, %s1554_s28  }
 0x266   : > { %s1147_s23 = sshll.u32 %s978_s8, 3  ;;  %s968_s4 = scalar_lea.sflag [#allocation8], %s2013_s11 }
 0x26b   : > { %837 = vrot.lane.b32.xlu2 %v629_v63, %s1601_s30 }
 0x26c   : > { %736 = vrot.lane.b32.xlu1 %v629_v63, %s1599_s18 }
 0x273   : > { %833 = vrot.lane.b32.xlu2 %v539_v0, %s1601_s30 }
 0x274   : > { %732 = vrot.lane.b32.xlu1 %v539_v0, %s1599_s18 }
 0x2b5   : > { %v739_v1 = vpop.permute.xlu2 %738 }
 0x2b6   : > { %1136 = vmatpush.xpose.msk.msrb.mxu1 %vm543_vm8, %v739_v1 }
 0x2bd   : > { %v840_v2 = vpop.permute.xlu2 %839 }
 0x2be   : > { %1140 = vmatpush.xpose.msk.msrb.mxu0 %vm543_vm8, %v840_v2 }
 0x2c5   : > { %v838_v3 = vpop.permute.xlu2 %837 }
 0x2c6   : > { %1141 = vmatpush.xpose.msk.msrb.mxu0 %vm543_vm8, %v838_v3 }
 0x2cd   : > { %v636_v6 = vpop.permute.xlu1 %635  ;;  %v834_v7 = vpop.permute.xlu2 %833 }
 0x2ce   : > { %v638_v8 = vpop.permute.xlu0 %637  ;;  %1142 = vmatmul.msk.f32.vlgmr.msrb.gmra.mxu0 %vm543_vm8, %v834_v7 }
 0x2cf   : > { %1132 = vmatpush.xpose.msk.msra.mxu2 %vm543_vm8, %v638_v8 }
 0x2d3   : > { %1133 = vmatpush.xpose.msk.msra.mxu2 %vm543_vm8, %v636_v6 }
 0x2d6   : > { %v632_v9 = vpop.permute.xlu1 %631 }
 0x2d7   : > { %1134 = vmatmul.msk.f32.vlgmr.msra.gmra.mxu2 %vm543_vm8, %v632_v9 }
 0x2de   : > { %v737_v16 = vpop.permute.xlu1 %736 }
 0x2df   : > { %1137 = vmatpush.xpose.msk.msrb.mxu1 %vm543_vm8, %v737_v16 }
 0x2e0   : > { %v570_v11 = vpop.f32.mrf.mxu0 }
 0x2e1   : > { %v573_v12 = vmul.f32 0.35355338, %v570_v11 }
 0x2e3   : > { %v577_v13 = vadd.f32 %v1318_v10, %v573_v12 }
 0x2e5   : > { %v579_v14 = vsel %vm578_vm9, %v577_v13, -inf }
 0x2e6   : > { %580 = vmax.xlane.f32.xlu0 %v579_v14  ;;  %v733_v29 = vpop.permute.xlu1 %732 }
 0x2fa   : > { %1304 = vrot.lane.b32.xlu0 %v1303_v15, %s1600_s3 }
 0x34b   : > { %v864_v17 = vpop.f32.mrf.mxu0 }
 0x34c   : > { %v867_v18 = vmul.f32 0.35355338, %v864_v17 }
 0x34e   : > { %v868_v19 = vadd.f32 %v1318_v10, %v867_v18 }
 0x350   : > { %v869_v20 = vsel %vm578_vm9, %v868_v19, -inf }
 0x351   : > { %870 = vmax.xlane.f32.xlu0 %v869_v20 }
 0x359   : > { %v581_v21 = vpop.xlane.xlu0 %580 }
 0x35a   : > { %v582_v22 = vsub.f32 %v577_v13, %v581_v21  ;;  %v662_v23 = vpop.f32.mrf.mxu2 }
 0x35b   : > { %v665_v24 = vmul.f32 0.35355338, %v662_v23 }
 0x35c   : > { %v583_v25 = vmul.f32 1.442695, %v582_v22 }
 0x35d   : > { %v666_v26 = vadd.f32 %v1318_v10, %v665_v24 }
 0x35e   : > { %1320 = vpow2.f32 %v583_v25 }
 0x35f   : > { %v667_v27 = vsel %vm578_vm9, %v666_v26, -inf }
 0x360   : > { %668 = vmax.xlane.f32.xlu1 %v667_v27 }
 0x364   : > { %v1321_v28 = vpop.eup %1320 }
 0x365   : > { %1131 = vmatmul.msk.f32.vlgmr.msra.gmra.mxu1 %vm578_vm9, %v1321_v28  ;;  %v585_v41 = vsel %vm578_vm9, %v1321_v28, 0.0 }
 0x36c   : > { %v1305_v30 = vpop.permute.xlu0 %1304 }
 0x36d   : > { %1138 = vmatmul.msk.f32.vlgmr.msrb.gmra.mxu1 %vm543_vm8, %v733_v29  ;;  %v1306_v31 = vunpack.i.l.bf16 %v1305_v30  ;;  %v1307_v32 = vunpack.i.h.bf16 %v1305_v30 }
 0x36f   : > { %703 = vmatpush.msra.mxu3 %v1306_v31 }
 0x371   : > { %704 = vmatpush.msra.mxu3 %v1307_v32 }
 0x379   : > { %1314 = vrot.lane.b32.xlu1 %v1303_v15, %s1601_s30  ;;  %s2010_s30 = sld [smem:[#allocation33_spill]] }
 0x3c4   : > { %v871_v33 = vpop.xlane.xlu0 %870 }
 0x3c5   : > { %v872_v34 = vsub.f32 %v868_v19, %v871_v33 }
 0x3c7   : > { %v873_v35 = vmul.f32 1.442695, %v872_v34 }
 0x3c9   : > { %1322 = vpow2.f32 %v873_v35 }
 0x3cf   : > { %v1323_v36 = vpop.eup %1322 }
 0x3d0   : > { %v875_v37 = vsel %vm578_vm9, %v1323_v36, 0.0 }
 0x3d1   : > { %876 = vadd.xlane.f32.xlu0 %v875_v37 }
 0x3d3   : > { %v669_v38 = vpop.xlane.xlu1 %668 }
 0x3d4   : > { %v670_v39 = vsub.f32 %v666_v26, %v669_v38 }
 0x3d6   : > { %v671_v40 = vmul.f32 1.442695, %v670_v39 }
 0x3d8   : > { %1324 = vpow2.f32 %v671_v40 }
 0x3d9   : > { %586 = vadd.xlane.f32.xlu0 %v585_v41 }
 0x3de   : > { %v1325_v42 = vpop.eup %1324 }
 0x3df   : > { %1135 = vmatmul.msk.f32.vlgmr.msra.gmra.mxu3 %vm578_vm9, %v1325_v42  ;;  %v673_v51 = vsel %vm578_vm9, %v1325_v42, 0.0 }
 0x3e2   : > { %v610_v43 = vpop.f32.mrf.mxu1 }
 0x3ea   : > { %v763_v44 = vpop.f32.mrf.mxu1 }
 0x3eb   : > { %v766_v45 = vmul.f32 0.35355338, %v763_v44  ;;  %v1315_v46 = vpop.permute.xlu1 %1314 }
 0x3ec   : > { %v1316_v47 = vunpack.i.l.bf16 %v1315_v46  ;;  %v1317_v48 = vunpack.i.h.bf16 %v1315_v46 }
 0x3ed   : > { %v767_v49 = vadd.f32 %v1318_v10, %v766_v45 }
 0x3ee   : > { %905 = vmatpush.msrb.mxu2 %v1316_v47 }
 0x3ef   : > { %v768_v50 = vsel %vm578_vm9, %v767_v49, -inf }
 0x3f0   : > { %906 = vmatpush.msrb.mxu2 %v1317_v48  ;;  %769 = vmax.xlane.f32.xlu2 %v768_v50  ;;  %v936_v48 = vld [vmem:[#allocation12 + $0x18] sm:$0xff]  ;;  %v934_v50 = vld [vmem:[#allocation12 + $0x8] sm:$0xff] }
 0x3f1   : > { %1143 = vmatmul.msk.f32.vlgmr.msrb.gmra.mxu2 %vm578_vm9, %v1323_v36  ;;  %957 = vmatpush.msra.mxu1 %v936_v48 }
 0x408   : > { %1309 = vrot.lane.b32.xlu2 %v1303_v15, %s1599_s18  ;;  %s2009_s18 = sld [smem:[#allocation32_spill]] }
 0x431   : > { %674 = vadd.xlane.f32.xlu2 %v673_v51  ;;  %v933_v51 = vld [vmem:[#allocation12] sm:$0xff] }
 0x444   : > { %v877_v52 = vpop.xlane.xlu0 %876 }
 0x445   : > { %vm916_vm14 = vweird.f32 %v877_v52  ;;  %v922_v13 = vand.u32 2147483648, %v877_v52  ;;  %v920_v15 = vand.u32 2147483647, %v877_v52 }
 0x447   : > { %v923_v16 = vor.u32 1.1754944e-38, %v922_v13  ;;  %vm921_vm1 = vcmp.eq.f32.partialorder %v920_v15, 8.507059e+37 }
 0x44c   : > { %v587_v53 = vpop.xlane.xlu0 %586 }
 0x44d   : > { %1326 = vrcp.f32 %v587_v53  ;;  %v624_v57 = vand.u32 2147483648, %v587_v53  ;;  %v622_v59 = vand.u32 2147483647, %v587_v53  ;;  %vm618_vm11 = vweird.f32 %v587_v53 }
 0x44f   : > { %v625_v61 = vor.u32 1.1754944e-38, %v624_v57  ;;  %vm623_vm13 = vcmp.eq.f32.partialorder %v622_v59, 8.507059e+37 }
 0x453   : > { %v1327_v54 = vpop.eup %1326 }
 0x454   : > { %v614_v55 = vmul.f32 %v1327_v54, %v587_v53  ;;  %vm619_vm10 = vweird.f32 %v1327_v54 }
 0x455   : > { %vm620_vm12 = vmor %vm618_vm11, %vm619_vm10  ;;  %vm728_vm10 = vcmask 130112   ;;  %vm829_vm11 = vcmask 195712  }
 0x456   : > { %v615_v56 = vsub.f32 1.0, %v614_v55  ;;  %v1319_v55 = vld [vmem:[%s2009_s18] ss:$0 sm:$0xff] }
 0x458   : > { %v616_v58 = vmul.f32 %v1327_v54, %v615_v56  ;;  %v537_v56 = vld [vmem:[%s536_s17] sm:$0xff] }
 0x45a   : > { %v617_v60 = vadd.f32 %v1327_v54, %v616_v58 }
 0x45c   : > { %v621_v62 = vsel %vm620_vm12, %v1327_v54, %v617_v60  ;;  %vm930_vm12 = vcmask 261312  }
 0x45d   : > { %v626_v63 = vsel %vm623_vm13, %v625_v61, %v621_v62  ;;  %vm941_vm13 = vcmask 261120  }
 0x45e   : > { %v627_v0 = vmul.f32 %v626_v63, %v610_v43 }
 0x460   : > { %628 = vst.msk [vmem:[#allocation5] sm:$0xff] %vm543_vm8, %v627_v0 }
 0x462   : > { %v706_v31 = vpop.f32.mrf.mxu3 }
 0x463   : > { %v770_v1 = vpop.xlane.xlu2 %769 }
 0x464   : > { %v771_v2 = vsub.f32 %v767_v49, %v770_v1  ;;  %v935_v49 = vld [vmem:[#allocation12 + $0x10] sm:$0xff] }
 0x465   : > { %958 = vmatpush.msra.mxu1 %v935_v49 }
 0x466   : > { %v772_v3 = vmul.f32 1.442695, %v771_v2 }
 0x467   : > { %959 = vmatpush.msra.mxu1 %v934_v50 }
 0x468   : > { %1328 = vpow2.f32 %v772_v3 }
 0x469   : > { %1330 = vrcp.f32 %v877_v52  ;;  %960 = vmatpush.msra.mxu1 %v933_v51 }
 0x46b   : > { %v1310_v4 = vpop.permute.xlu2 %1309 }
 0x46c   : > { %v1311_v5 = vunpack.i.l.bf16 %v1310_v4  ;;  %v1312_v7 = vunpack.i.h.bf16 %v1310_v4 }
 0x46e   : > { %v1329_v6 = vpop.eup %1328  ;;  %804 = vmatpush.msrb.mxu3 %v1311_v5 }
 0x46f   : > { %v774_v8 = vsel %vm578_vm9, %v1329_v6, 0.0  ;;  %v1331_v9 = vpop.eup %1330 }
 0x470   : > { %775 = vadd.xlane.f32.xlu1 %v774_v8  ;;  %805 = vmatpush.msrb.mxu3 %v1312_v7  ;;  %v912_v10 = vmul.f32 %v1331_v9, %v877_v52  ;;  %vm917_vm15 = vweird.f32 %v1331_v9 }
 0x471   : > { %1139 = vmatmul.msk.f32.vlgmr.msrb.gmra.mxu3 %vm578_vm9, %v1329_v6  ;;  %vm918_vm0 = vmor %vm916_vm14, %vm917_vm15 }
 0x472   : > { %v913_v11 = vsub.f32 1.0, %v912_v10 }
 0x474   : > { %v914_v12 = vmul.f32 %v1331_v9, %v913_v11  ;;  %v908_v18 = vpop.f32.mrf.mxu2 }
 0x476   : > { %v915_v14 = vadd.f32 %v1331_v9, %v914_v12 }
 0x478   : > { %v919_v17 = vsel %vm918_vm0, %v1331_v9, %v915_v14 }
 0x479   : > { %v924_v19 = vsel %vm921_vm1, %v923_v16, %v919_v17 }
 0x47a   : > { %v925_v20 = vmul.f32 %v924_v19, %v908_v18 }
 0x489   : > { %927 = vrot.lane.b32.xlu1 %v925_v20, %s1602_s24  ;;  %s2011_s24 = smov %s2010_s30 }
 0x4a4   : > { %v675_v21 = vpop.xlane.xlu2 %674 }
 0x4a5   : > { %1332 = vrcp.f32 %v675_v21  ;;  %v720_v25 = vand.u32 2147483648, %v675_v21  ;;  %v718_v27 = vand.u32 2147483647, %v675_v21  ;;  %vm714_vm3 = vweird.f32 %v675_v21 }
 0x4a7   : > { %v721_v29 = vor.u32 1.1754944e-38, %v720_v25  ;;  %vm719_vm5 = vcmp.eq.f32.partialorder %v718_v27, 8.507059e+37 }
 0x4ab   : > { %v1333_v22 = vpop.eup %1332 }
 0x4ac   : > { %v710_v23 = vmul.f32 %v1333_v22, %v675_v21  ;;  %vm715_vm2 = vweird.f32 %v1333_v22 }
 0x4ad   : > { %vm716_vm4 = vmor %vm714_vm3, %vm715_vm2 }
 0x4ae   : > { %v711_v24 = vsub.f32 1.0, %v710_v23 }
 0x4b0   : > { %v712_v26 = vmul.f32 %v1333_v22, %v711_v24 }
 0x4b2   : > { %v713_v28 = vadd.f32 %v1333_v22, %v712_v26 }
 0x4b4   : > { %v717_v30 = vsel %vm716_vm4, %v1333_v22, %v713_v28 }
 0x4b5   : > { %v722_v32 = vsel %vm719_vm5, %v721_v29, %v717_v30 }
 0x4b6   : > { %v723_v33 = vmul.f32 %v722_v32, %v706_v31 }
 0x4b8   : > { %725 = vrot.lane.b32.xlu0 %v723_v33, %s1603_s25 }
 0x4e3   : > { %v776_v34 = vpop.xlane.xlu1 %775 }
 0x4e4   : > { %1334 = vrcp.f32 %v776_v34  ;;  %v821_v38 = vand.u32 2147483648, %v776_v34  ;;  %v819_v40 = vand.u32 2147483647, %v776_v34  ;;  %vm815_vm7 = vweird.f32 %v776_v34 }
 0x4e6   : > { %v822_v42 = vor.u32 1.1754944e-38, %v821_v38  ;;  %vm820_vm9 = vcmp.eq.f32.partialorder %v819_v40, 8.507059e+37 }
 0x4ea   : > { %v1335_v35 = vpop.eup %1334 }
 0x4eb   : > { %v811_v36 = vmul.f32 %v1335_v35, %v776_v34  ;;  %vm816_vm6 = vweird.f32 %v1335_v35 }
 0x4ec   : > { %vm817_vm8 = vmor %vm815_vm7, %vm816_vm6 }
 0x4ed   : > { %v812_v37 = vsub.f32 1.0, %v811_v36 }
 0x4ef   : > { %v813_v39 = vmul.f32 %v1335_v35, %v812_v37 }
 0x4f1   : > { %v814_v41 = vadd.f32 %v1335_v35, %v813_v39 }
 0x4f3   : > { %v818_v43 = vsel %vm817_vm8, %v1335_v35, %v814_v41 }
 0x4f4   : > { %v807_v44 = vpop.f32.mrf.mxu3  ;;  %v823_v45 = vsel %vm820_vm9, %v822_v42, %v818_v43 }
 0x4f5   : > { %v824_v46 = vmul.f32 %v823_v45, %v807_v44 }
 0x4f7   : > { %826 = vrot.lane.b32.xlu2 %v824_v46, %s1604_s27  ;;  %s980_s27 = scalar_lea.hbm %s2010_s30, %s1147_s23  ;;  %s1476_s23 = scalar_lea.hbm %s2011_s24, 32 }
 0x4f8   : > { %s984_s0 = sshll.u32 %s980_s27, 4  ;;  %s985_s0 = int_to_ptr.hbm [resolvable:$true] %s984_s0 }
 0x4f9   : > { %s1470_s12 = sshra.s32 %s985_s0, 4  ;;  %s1471_s12 = int_to_ptr.hbm [resolvable:$true] %s1470_s12 }
 0x4fa   : > { %s1472_s20 = scalar_lea.hbm %s1471_s12, 8  ;;  %p1477_p2 = scmp.lt.s32.totalorder %s1471_s12, %s2011_s24 }
 0x4fb   : > { %v928_v53 = vpop.permute.xlu1 %927  ;;  %p1473_p1 = scmp.ne.s32.totalorder %s1471_s12, %s1472_s20  ;;  %p1478_p4 = scmp.lt.s32.totalorder %s1476_s23, %s1472_s20 }
 0x4fd   : > { %p1474_p11 = pnand %p1473_p1, %p1721_p7  ;;  %p1479_p5 = por %p1478_p4, %p1477_p2 }
 0x4ff   : > { %p1475_p0 = pneg %p1474_p11 }
 0x501   : > { %p1480_p6 = pnand %p1479_p5, %p1475_p0 }
 0x52a   : > { %v726_v47 = vpop.permute.xlu0 %725 }
 0x52b   : > { %729 = vst.msk [vmem:[#allocation5] sm:$0xff] %vm728_vm10, %v726_v47 }
 0x551   : > { %v827_v52 = vpop.permute.xlu2 %826 }
 0x552   : > { %830 = vst.msk [vmem:[#allocation5] sm:$0xff] %vm829_vm11, %v827_v52 }
 0x553   : > { %931 = vst.msk [vmem:[#allocation5] sm:$0xff] %vm930_vm12, %v928_v53 }
 0x55a   : > { %v932_v54 = vld [vmem:[#allocation5] sm:$0xff] }
 0x55b   : > { %1144 = vmatmul.msk.f32.vlgmr.msra.gmra.mxu1 %vm941_vm13, %v932_v54 }
 0x5d8   : > { %v962_v57 = vpop.f32.mrf.mxu1 }
 0x5d9   : > { %v963_v58 = vadd.f32 %v1319_v55, %v962_v57 }
 0x5db   : > { %v965_v59 = vadd.f32 %v963_v58, %v537_v56 }
 0x5dd   : > { %966 = vst.msk [vmem:[%s407_s19] sm:$0xff] %vm941_vm13, %v965_v59 }
 0x5de   : > { %1483 = shalt.err (!%p1480_p6)
}
 0x5df   : > { %1167 = dma.vmem_to_hbm [thread:$0]  (%p1721_p7), %s983_s22, 128, %s985_s0, %s968_s4  }
 0x5e0 PF: > { %s2014_s21 = sld [smem:[#allocation20_spill]]  ;;  %p1192_p8 = scmp.ge.s32.totalorder %s1590_s15, 2 }
 0x5e2   : > { %p1184_p10 = pnand %p1192_p8, %p1726_p9 }
 0x5e4   : > { %p1185_p12 = pneg %p1184_p10 }
 0x5e6   : > { %s996_s26 = sand.u32 1, %s2014_s21  }
 0x5e7   : > { %s997_s18 = scalar_lea.sflag [#allocation8], %s996_s26 }
 0x5e8   : > { %1545 = dma.done.wait (%p1185_p12), %s997_s18, 128  }
 0x5e9   : > { %1547 = vsyncadd (%p1185_p12), %s997_s18, 4294967168  ;;  %s28_s15 = sadd.s32 1, %s1590_s15   ;;  %s2016_s11 = sld [smem:[#allocation22_spill]] }
 0x5ea   : > { %p25_p13 = scmp.ge.s32.totalorder %s28_s15, 6   ;;  %s2017_s0 = sld [smem:[#allocation25_spill]] }
 0x5eb   : > { %s2018_s22 = sld [smem:[#allocation26_spill]]  ;;  %s2019_s27 = smov %s1554_s28 }
 0x5ec   : > { %s2020_s28 = smov %s1558_s29  ;;  %s2021_s29 = smov %s1782_s7 }
 0x5ed   : > { %s2022_s30 = smov %s1566_s9  ;;  %s2023_s9 = smov %s1570_s10 }
 0x5ee   : > { %s2024_s10 = smov %s1777_s13  ;;  %s2025_s12 = smov %s1586_s14 }
 0x5ef   :  { %27 = sbr.rel (!%p25_p13) target bundleno = 20 (0x14), region = 124 }
 0x5f0   : > { %s2026_s13 = smov %s2017_s0 }
 0x5f1   : > { %s2027_s14 = smov %s2018_s22 }
 0x5f4   :  { %1003 = vsyncpa [#allocation7], 1 }
 0x5f5   :  { %1005 = vsyncpa [#allocation7 + $0x1], 1 }
 0x5f6   :  { %1006 = vsyncpa [#allocation10], 1 }
 0x5f7   :  { %1008 = vsyncpa [#allocation10 + $0x1], 1 }
 0x5f8   :  { %1009 = vsyncpa [#allocation13], 1 }
 0x5f9   :  { %1010 = vsyncpa [#allocation8], 1 }
 0x5fa   :  { %1012 = vsyncpa [#allocation8 + $0x1], 1 }

</bundles_post_ra>
